<compile_context>
chip_gen: v6e
topology: v6e:2x2x1
jax: 0.10.0
libtpu: 0.0.40
codegen_flags: <defaults>
</compile_context>

<pallas_src>
import functools

import jax
import jax.numpy as jnp
from jax.experimental import pallas as pl
from jax.experimental.pallas import tpu as pltpu

LANE = 128          # lane width / padding granularity for feature dims
TILE = 256          # A_hat tile (rows and K) — MXU-friendly on v6e/v7x
VMEM_LIMIT = 32 * 1024 * 1024   # explicit scoped-VMEM budget (<< 64 MiB on v7x)


# ---------------------------------------------------------------------------
# Kernel 1: feature transform  XW = X @ W   (row-tiled, bf16 output)
# ---------------------------------------------------------------------------
def _transform_kernel(x_ref, w_ref, o_ref):
    o_ref[...] = jnp.dot(
        x_ref[...], w_ref[...], preferred_element_type=jnp.float32
    ).astype(o_ref.dtype)


def _feature_transform(x, w, tile):
    n_p, f_p = x.shape
    h_p = w.shape[1]
    return pl.pallas_call(
        _transform_kernel,
        out_shape=jax.ShapeDtypeStruct((n_p, h_p), jnp.bfloat16),
        grid=(n_p // tile,),
        in_specs=[
            pl.BlockSpec((tile, f_p), lambda i: (i, 0)),
            pl.BlockSpec((f_p, h_p), lambda i: (0, 0)),
        ],
        out_specs=pl.BlockSpec((tile, h_p), lambda i: (i, 0)),
        compiler_params=pltpu.CompilerParams(
            dimension_semantics=("parallel",),
            vmem_limit_bytes=VMEM_LIMIT,
        ),
    )(x, w)


# ---------------------------------------------------------------------------
# Kernel 2: aggregation  out = act(A_hat @ XW + b)
# grid = (row tiles, K tiles); f32 accumulator in VMEM scratch.
# ---------------------------------------------------------------------------
def _aggregate_kernel(a_ref, xw_ref, b_ref, o_ref, acc_ref, *, activation):
    @pl.when(pl.program_id(1) == 0)
    def _init():
        acc_ref[...] = jnp.zeros_like(acc_ref)

    acc_ref[...] += jnp.dot(
        a_ref[...], xw_ref[...], preferred_element_type=jnp.float32
    )

    @pl.when(pl.program_id(1) == pl.num_programs(1) - 1)
    def _finish():
        z = acc_ref[...] + b_ref[...]
        if activation == "relu":
            z = jnp.maximum(z, 0.0)
        else:  # "sigmoid"
            z = jax.nn.sigmoid(z)
        o_ref[...] = z.astype(o_ref.dtype)


def _aggregate(a, xw, b, tile, *, activation, out_dtype):
    n_p = a.shape[0]
    width = xw.shape[1]
    kernel = functools.partial(_aggregate_kernel, activation=activation)
    return pl.pallas_call(
        kernel,
        out_shape=jax.ShapeDtypeStruct((n_p, width), out_dtype),
        grid=(n_p // tile, n_p // tile),
        in_specs=[
            pl.BlockSpec((tile, tile), lambda i, k: (i, k)),    # A_hat tile
            pl.BlockSpec((tile, width), lambda i, k: (k, 0)),   # XW K-tile
            pl.BlockSpec((1, width), lambda i, k: (0, 0)),      # bias (full)
        ],
        out_specs=pl.BlockSpec((tile, width), lambda i, k: (i, 0)),
        scratch_shapes=[pltpu.VMEM((tile, width), jnp.float32)],
        compiler_params=pltpu.CompilerParams(
            dimension_semantics=("parallel", "arbitrary"),
            vmem_limit_bytes=VMEM_LIMIT,
        ),
    )(a, xw, b)


# ---------------------------------------------------------------------------
# Wrapper: pad to lane-dense / tile-aligned shapes, cast to bf16, run 2 layers.
# ---------------------------------------------------------------------------
def _ceil_to(x, m):
    return ((x + m - 1) // m) * m


def _pad_to(arr, shape):
    return jnp.pad(arr, [(0, s - d) for d, s in zip(arr.shape, shape)])


def species_gcn_forward(a_hat, x, w1, b1, w2, b2, *, tile=TILE):
    n, f = x.shape
    h_dim = w1.shape[1]
    o_dim = w2.shape[1]

    n_p = _ceil_to(n, tile)
    f_p = _ceil_to(f, LANE)
    h_p = _ceil_to(h_dim, LANE)
    o_p = _ceil_to(o_dim, LANE)     # lane-dense padded output width (>=128)

    a_p = _pad_to(a_hat, (n_p, n_p)).astype(jnp.bfloat16)
    x_p = _pad_to(x, (n_p, f_p)).astype(jnp.bfloat16)
    w1_p = _pad_to(w1, (f_p, h_p)).astype(jnp.bfloat16)
    b1_p = _pad_to(b1.reshape(1, -1), (1, h_p)).astype(jnp.float32)
    w2_p = _pad_to(w2, (h_p, o_p)).astype(jnp.bfloat16)
    b2_p = _pad_to(b2.reshape(1, -1), (1, o_p)).astype(jnp.float32)

    # layer 1: h = relu(A_hat @ (X @ W1) + b1)
    xw1 = _feature_transform(x_p, w1_p, tile)
    h = _aggregate(a_p, xw1, b1_p, tile, activation="relu",
                   out_dtype=jnp.bfloat16)

    # layer 2: out = sigmoid(A_hat @ (h @ W2) + b2)
    hw2 = _feature_transform(h, w2_p, tile)
    out = _aggregate(a_p, hw2, b2_p, tile, activation="sigmoid",
                     out_dtype=jnp.float32)

    return out[:n, :o_dim]   # slice real rows and real output column back out


# ---------------------------------------------------------------------------
# Glue: dense symmetric-normalized adjacency (PyG gcn_norm semantics).
# ---------------------------------------------------------------------------
def build_normalized_adjacency(edge_index, num_nodes):
    src, dst = edge_index[0], edge_index[1]
    a = jnp.zeros((num_nodes, num_nodes), jnp.float32)
    a = a.at[dst, src].add(1.0)                       # message src -> dst
    # add_remaining_self_loops: only add a weight-1 self loop where none exists
    idx = jnp.arange(num_nodes)
    diag = a[idx, idx]
    a = a.at[idx, idx].set(jnp.where(diag > 0, diag, 1.0))
    deg = a.sum(axis=1)
    dinv = jnp.where(deg > 0, jax.lax.rsqrt(deg), 0.0)
    return a * dinv[:, None] * dinv[None, :]          # D^-1/2 A D^-1/2


# ---------------------------------------------------------------------------
# Deterministic parameter init (Glorot-uniform like PyG GCNConv, zero bias).
# ---------------------------------------------------------------------------
def init_params(key, in_dim, hidden):
    k1, k2 = jax.random.split(key)

    def glorot(k, fan_in, fan_out):
        limit = jnp.sqrt(6.0 / (fan_in + fan_out))
        return jax.random.uniform(k, (fan_in, fan_out), jnp.float32, -limit, limit)

    w1 = glorot(k1, in_dim, hidden)
    b1 = jnp.zeros((hidden,), jnp.float32)
    w2 = glorot(k2, hidden, 1)
    b2 = jnp.zeros((1,), jnp.float32)
    return w1, b1, w2, b2


# ---------------------------------------------------------------------------
# Pure-JAX reference (same bf16 casts / f32 accumulation as the kernel path).
# ---------------------------------------------------------------------------
def reference_forward(a_hat, x, w1, b1, w2, b2):
    a = a_hat.astype(jnp.bfloat16)
    xb = x.astype(jnp.bfloat16)
    w1b = w1.astype(jnp.bfloat16)
    w2b = w2.astype(jnp.bfloat16)
    xw = jnp.dot(xb, w1b, preferred_element_type=jnp.float32).astype(jnp.bfloat16)
    h = jnp.maximum(jnp.dot(a, xw, preferred_element_type=jnp.float32) + b1, 0.0)
    h = h.astype(jnp.bfloat16)
    hw = jnp.dot(h, w2b, preferred_element_type=jnp.float32).astype(jnp.bfloat16)
    z = jnp.dot(a, hw, preferred_element_type=jnp.float32) + b2
    return jax.nn.sigmoid(z)


if __name__ == "__main__":
    key = jax.random.PRNGKey(0)
    k_x, k_e, k_p = jax.random.split(key, 3)

    num_nodes = 512      # -> 2x2 grid of 256x256 A_hat tiles
    in_dim = 8
    hidden = 32
    num_edges = 4096

    # node features
    x = jax.random.normal(k_x, (num_nodes, in_dim), jnp.float32)

    # random directed edges, made symmetric (typical undirected graph input)
    e = jax.random.randint(k_e, (2, num_edges), 0, num_nodes)
    edge_index = jnp.concatenate([e, e[::-1]], axis=1)   # (2, 2*num_edges)

    a_hat = build_normalized_adjacency(edge_index, num_nodes)
    w1, b1, w2, b2 = init_params(k_p, in_dim, hidden)

    fwd = jax.jit(species_gcn_forward)
    out = jax.block_until_ready(fwd(a_hat, x, w1, b1, w2, b2))

    ref = reference_forward(a_hat, x, w1, b1, w2, b2)
    assert out.shape == (num_nodes, 1)
    assert jnp.allclose(out, ref, atol=2e-3, rtol=2e-3), (
        float(jnp.max(jnp.abs(out - ref))))

    print("KERNEL_OK")
</pallas_src>

<mosaic_0001>
module attributes {stable_mosaic.version = 11 : i64} {
  func.func @_transform_kernel(%arg0: i32, %arg1: memref<256x128xbf16, #tpu.memory_space<vmem>>, %arg2: memref<128x128xbf16, #tpu.memory_space<vmem>>, %arg3: memref<256x128xbf16, #tpu.memory_space<vmem>>) attributes {dimension_semantics = [#tpu.dimension_semantics<parallel>], iteration_bounds = array<i64: 2>, scalar_prefetch = 0 : i64, scratch_operands = 0 : i64, tpu.core_type = #tpu.core_type<tc>, window_params = [{transform_indices = @transform_0, window_bounds = array<i64: 256, 128>}, {pipeline_mode = #tpu.pipeline_mode<synchronous>, transform_indices = @transform_1, window_bounds = array<i64: 128, 128>}, {transform_indices = @transform_2, window_bounds = array<i64: 256, 128>}]} {
    %c0 = arith.constant 0 : index
    %c0_0 = arith.constant 0 : index
    %0 = vector.load %arg1[%c0, %c0_0] : memref<256x128xbf16, #tpu.memory_space<vmem>>, vector<256x128xbf16>
    %c0_1 = arith.constant 0 : index
    %c0_2 = arith.constant 0 : index
    %1 = vector.load %arg2[%c0_1, %c0_2] : memref<128x128xbf16, #tpu.memory_space<vmem>>, vector<128x128xbf16>
    %cst = arith.constant dense<0.000000e+00> : vector<256x128xf32>
    %2 = tpu.matmul %0, %1, %cst {dimension_numbers = #tpu.dot_dimension_numbers<[1], [0], [0], [1], [0, 0, 1, 1], [], []>} : vector<256x128xbf16>, vector<128x128xbf16>, vector<256x128xf32> -> vector<256x128xf32>
    %3 = arith.truncf %2 : vector<256x128xf32> to vector<256x128xbf16>
    %c0_3 = arith.constant 0 : index
    %c0_4 = arith.constant 0 : index
    %4 = vector.load %arg3[%c0_3, %c0_4] : memref<256x128xbf16, #tpu.memory_space<vmem>>, vector<256x128xbf16>
    tpu.vector_store %arg3[%c0_3, %c0_4], %3 {strides = array<i32>} : memref<256x128xbf16, #tpu.memory_space<vmem>>, vector<256x128xbf16>,
    return
  }
  func.func @transform_0(%arg0: i32) -> (i32, i32) {
    %c0_i32 = arith.constant 0 : i32
    %c0_i32_0 = arith.constant 0 : i32
    return %arg0, %c0_i32 : i32, i32
  }
  func.func @transform_1(%arg0: i32) -> (i32, i32) {
    %c0_i32 = arith.constant 0 : i32
    %c0_i32_0 = arith.constant 0 : i32
    %c0_i32_1 = arith.constant 0 : i32
    return %c0_i32, %c0_i32_0 : i32, i32
  }
  func.func @transform_2(%arg0: i32) -> (i32, i32) {
    %c0_i32 = arith.constant 0 : i32
    %c0_i32_0 = arith.constant 0 : i32
    return %arg0, %c0_i32 : i32, i32
  }
}

module attributes {stable_mosaic.version = 11 : i64} {
  func.func @_aggregate_kernel(%arg0: i32, %arg1: i32, %arg2: memref<256x256xbf16, #tpu.memory_space<vmem>>, %arg3: memref<256x128xbf16, #tpu.memory_space<vmem>>, %arg4: memref<1x128xf32, #tpu.memory_space<vmem>>, %arg5: memref<256x128xbf16, #tpu.memory_space<vmem>>, %arg6: memref<256x128xf32, #tpu.memory_space<vmem>>) attributes {dimension_semantics = [#tpu.dimension_semantics<parallel>, #tpu.dimension_semantics<arbitrary>], iteration_bounds = array<i64: 2, 2>, scalar_prefetch = 0 : i64, scratch_operands = 1 : i64, tpu.core_type = #tpu.core_type<tc>, window_params = [{transform_indices = @transform_0, window_bounds = array<i64: 256, 256>}, {transform_indices = @transform_1, window_bounds = array<i64: 256, 128>}, {pipeline_mode = #tpu.pipeline_mode<synchronous>, transform_indices = @transform_2, window_bounds = array<i64: 1, 128>}, {transform_indices = @transform_3, window_bounds = array<i64: 256, 128>}]} {
    %c0_i32 = arith.constant 0 : i32
    %0 = arith.cmpi eq, %arg1, %c0_i32 : i32
    %1 = arith.extui %0 : i1 to i32
    %c0_i32_0 = arith.constant 0 : i32
    %2 = arith.cmpi ne, %1, %c0_i32_0 : i32
    scf.if %2 {
      %cst_9 = arith.constant 0.000000e+00 : f32
      %12 = vector.broadcast %cst_9 : f32 to vector<256x128xf32>
      %c0_10 = arith.constant 0 : index
      %c0_11 = arith.constant 0 : index
      %13 = vector.load %arg6[%c0_10, %c0_11] : memref<256x128xf32, #tpu.memory_space<vmem>>, vector<256x128xf32>
      tpu.vector_store %arg6[%c0_10, %c0_11], %12 {strides = array<i32>} : memref<256x128xf32, #tpu.memory_space<vmem>>, vector<256x128xf32>,
    } else {
    }
    %c0 = arith.constant 0 : index
    %c0_1 = arith.constant 0 : index
    %3 = vector.load %arg6[%c0, %c0_1] : memref<256x128xf32, #tpu.memory_space<vmem>>, vector<256x128xf32>
    %c0_2 = arith.constant 0 : index
    %c0_3 = arith.constant 0 : index
    %4 = vector.load %arg2[%c0_2, %c0_3] : memref<256x256xbf16, #tpu.memory_space<vmem>>, vector<256x256xbf16>
    %c0_4 = arith.constant 0 : index
    %c0_5 = arith.constant 0 : index
    %5 = vector.load %arg3[%c0_4, %c0_5] : memref<256x128xbf16, #tpu.memory_space<vmem>>, vector<256x128xbf16>
    %cst = arith.constant dense<0.000000e+00> : vector<256x128xf32>
    %6 = tpu.matmul %4, %5, %cst {dimension_numbers = #tpu.dot_dimension_numbers<[1], [0], [0], [1], [0, 0, 1, 1], [], []>} : vector<256x256xbf16>, vector<256x128xbf16>, vector<256x128xf32> -> vector<256x128xf32>
    %7 = arith.addf %3, %6 : vector<256x128xf32>
    %c0_6 = arith.constant 0 : index
    %c0_7 = arith.constant 0 : index
    %8 = vector.load %arg6[%c0_6, %c0_7] : memref<256x128xf32, #tpu.memory_space<vmem>>, vector<256x128xf32>
    tpu.vector_store %arg6[%c0_6, %c0_7], %7 {strides = array<i32>} : memref<256x128xf32, #tpu.memory_space<vmem>>, vector<256x128xf32>,
    %c1_i32 = arith.constant 1 : i32
    %9 = arith.cmpi eq, %arg1, %c1_i32 : i32
    %10 = arith.extui %9 : i1 to i32
    %c0_i32_8 = arith.constant 0 : i32
    %11 = arith.cmpi ne, %10, %c0_i32_8 : i32
    scf.if %11 {
      %c0_9 = arith.constant 0 : index
      %c0_10 = arith.constant 0 : index
      %12 = vector.load %arg6[%c0_9, %c0_10] : memref<256x128xf32, #tpu.memory_space<vmem>>, vector<256x128xf32>
      %c0_11 = arith.constant 0 : index
      %c0_12 = arith.constant 0 : index
      %13 = vector.load %arg4[%c0_11, %c0_12] : memref<1x128xf32, #tpu.memory_space<vmem>>, vector<1x128xf32>
      %14 = vector.broadcast %13 : vector<1x128xf32> to vector<256x128xf32>
      %15 = arith.addf %12, %14 : vector<256x128xf32>
      %cst_13 = arith.constant 0.000000e+00 : f32
      %16 = vector.broadcast %cst_13 : f32 to vector<256x128xf32>
      %17 = arith.maximumf %15, %16 : vector<256x128xf32>
      %18 = arith.truncf %17 : vector<256x128xf32> to vector<256x128xbf16>
      %c0_14 = arith.constant 0 : index
      %c0_15 = arith.constant 0 : index
      %19 = vector.load %arg5[%c0_14, %c0_15] : memref<256x128xbf16, #tpu.memory_space<vmem>>, vector<256x128xbf16>
      tpu.vector_store %arg5[%c0_14, %c0_15], %18 {strides = array<i32>} : memref<256x128xbf16, #tpu.memory_space<vmem>>, vector<256x128xbf16>,
    } else {
    }
    return
  }
  func.func @transform_0(%arg0: i32, %arg1: i32) -> (i32, i32) {
    %c0_i32 = arith.constant 0 : i32
    return %arg0, %arg1 : i32, i32
  }
  func.func @transform_1(%arg0: i32, %arg1: i32) -> (i32, i32) {
    %c0_i32 = arith.constant 0 : i32
    %c0_i32_0 = arith.constant 0 : i32
    return %arg1, %c0_i32 : i32, i32
  }
  func.func @transform_2(%arg0: i32, %arg1: i32) -> (i32, i32) {
    %c0_i32 = arith.constant 0 : i32
    %c0_i32_0 = arith.constant 0 : i32
    %c0_i32_1 = arith.constant 0 : i32
    return %c0_i32, %c0_i32_0 : i32, i32
  }
  func.func @transform_3(%arg0: i32, %arg1: i32) -> (i32, i32) {
    %c0_i32 = arith.constant 0 : i32
    %c0_i32_0 = arith.constant 0 : i32
    return %arg0, %c0_i32 : i32, i32
  }
}

module attributes {stable_mosaic.version = 11 : i64} {
  func.func @_aggregate_kernel(%arg0: i32, %arg1: i32, %arg2: memref<256x256xbf16, #tpu.memory_space<vmem>>, %arg3: memref<256x128xbf16, #tpu.memory_space<vmem>>, %arg4: memref<1x128xf32, #tpu.memory_space<vmem>>, %arg5: memref<256x128xf32, #tpu.memory_space<vmem>>, %arg6: memref<256x128xf32, #tpu.memory_space<vmem>>) attributes {dimension_semantics = [#tpu.dimension_semantics<parallel>, #tpu.dimension_semantics<arbitrary>], iteration_bounds = array<i64: 2, 2>, scalar_prefetch = 0 : i64, scratch_operands = 1 : i64, tpu.core_type = #tpu.core_type<tc>, window_params = [{transform_indices = @transform_0, window_bounds = array<i64: 256, 256>}, {transform_indices = @transform_1, window_bounds = array<i64: 256, 128>}, {pipeline_mode = #tpu.pipeline_mode<synchronous>, transform_indices = @transform_2, window_bounds = array<i64: 1, 128>}, {transform_indices = @transform_3, window_bounds = array<i64: 256, 128>}]} {
    %c0_i32 = arith.constant 0 : i32
    %0 = arith.cmpi eq, %arg1, %c0_i32 : i32
    %1 = arith.extui %0 : i1 to i32
    %c0_i32_0 = arith.constant 0 : i32
    %2 = arith.cmpi ne, %1, %c0_i32_0 : i32
    scf.if %2 {
      %cst_9 = arith.constant 0.000000e+00 : f32
      %12 = vector.broadcast %cst_9 : f32 to vector<256x128xf32>
      %c0_10 = arith.constant 0 : index
      %c0_11 = arith.constant 0 : index
      %13 = vector.load %arg6[%c0_10, %c0_11] : memref<256x128xf32, #tpu.memory_space<vmem>>, vector<256x128xf32>
      tpu.vector_store %arg6[%c0_10, %c0_11], %12 {strides = array<i32>} : memref<256x128xf32, #tpu.memory_space<vmem>>, vector<256x128xf32>,
    } else {
    }
    %c0 = arith.constant 0 : index
    %c0_1 = arith.constant 0 : index
    %3 = vector.load %arg6[%c0, %c0_1] : memref<256x128xf32, #tpu.memory_space<vmem>>, vector<256x128xf32>
    %c0_2 = arith.constant 0 : index
    %c0_3 = arith.constant 0 : index
    %4 = vector.load %arg2[%c0_2, %c0_3] : memref<256x256xbf16, #tpu.memory_space<vmem>>, vector<256x256xbf16>
    %c0_4 = arith.constant 0 : index
    %c0_5 = arith.constant 0 : index
    %5 = vector.load %arg3[%c0_4, %c0_5] : memref<256x128xbf16, #tpu.memory_space<vmem>>, vector<256x128xbf16>
    %cst = arith.constant dense<0.000000e+00> : vector<256x128xf32>
    %6 = tpu.matmul %4, %5, %cst {dimension_numbers = #tpu.dot_dimension_numbers<[1], [0], [0], [1], [0, 0, 1, 1], [], []>} : vector<256x256xbf16>, vector<256x128xbf16>, vector<256x128xf32> -> vector<256x128xf32>
    %7 = arith.addf %3, %6 : vector<256x128xf32>
    %c0_6 = arith.constant 0 : index
    %c0_7 = arith.constant 0 : index
    %8 = vector.load %arg6[%c0_6, %c0_7] : memref<256x128xf32, #tpu.memory_space<vmem>>, vector<256x128xf32>
    tpu.vector_store %arg6[%c0_6, %c0_7], %7 {strides = array<i32>} : memref<256x128xf32, #tpu.memory_space<vmem>>, vector<256x128xf32>,
    %c1_i32 = arith.constant 1 : i32
    %9 = arith.cmpi eq, %arg1, %c1_i32 : i32
    %10 = arith.extui %9 : i1 to i32
    %c0_i32_8 = arith.constant 0 : i32
    %11 = arith.cmpi ne, %10, %c0_i32_8 : i32
    scf.if %11 {
      %c0_9 = arith.constant 0 : index
      %c0_10 = arith.constant 0 : index
      %12 = vector.load %arg6[%c0_9, %c0_10] : memref<256x128xf32, #tpu.memory_space<vmem>>, vector<256x128xf32>
      %c0_11 = arith.constant 0 : index
      %c0_12 = arith.constant 0 : index
      %13 = vector.load %arg4[%c0_11, %c0_12] : memref<1x128xf32, #tpu.memory_space<vmem>>, vector<1x128xf32>
      %14 = vector.broadcast %13 : vector<1x128xf32> to vector<256x128xf32>
      %15 = arith.addf %12, %14 : vector<256x128xf32>
      %16 = arith.negf %15 : vector<256x128xf32>
      %17 = math.exp %16 : vector<256x128xf32>
      %cst_13 = arith.constant 1.000000e+00 : f32
      %18 = vector.broadcast %cst_13 : f32 to vector<256x128xf32>
      %19 = arith.addf %18, %17 : vector<256x128xf32>
      %20 = arith.divf %18, %19 : vector<256x128xf32>
      %c0_14 = arith.constant 0 : index
      %c0_15 = arith.constant 0 : index
      %21 = vector.load %arg5[%c0_14, %c0_15] : memref<256x128xf32, #tpu.memory_space<vmem>>, vector<256x128xf32>
      tpu.vector_store %arg5[%c0_14, %c0_15], %20 {strides = array<i32>} : memref<256x128xf32, #tpu.memory_space<vmem>>, vector<256x128xf32>,
    } else {
    }
    return
  }
  func.func @transform_0(%arg0: i32, %arg1: i32) -> (i32, i32) {
    %c0_i32 = arith.constant 0 : i32
    return %arg0, %arg1 : i32, i32
  }
  func.func @transform_1(%arg0: i32, %arg1: i32) -> (i32, i32) {
    %c0_i32 = arith.constant 0 : i32
    %c0_i32_0 = arith.constant 0 : i32
    return %arg1, %c0_i32 : i32, i32
  }
  func.func @transform_2(%arg0: i32, %arg1: i32) -> (i32, i32) {
    %c0_i32 = arith.constant 0 : i32
    %c0_i32_0 = arith.constant 0 : i32
    %c0_i32_1 = arith.constant 0 : i32
    return %c0_i32, %c0_i32_0 : i32, i32
  }
  func.func @transform_3(%arg0: i32, %arg1: i32) -> (i32, i32) {
    %c0_i32 = arith.constant 0 : i32
    %c0_i32_0 = arith.constant 0 : i32
    return %arg0, %c0_i32 : i32, i32
  }
}

</mosaic_0001>

<bundles_post_ra>
// kernel: species_gcn_forward.5
= control target key start
LH: loop header
LB: loop body
LE: loop exit
PB: predicated region body
PF: predicated region fallthrough
CT: control target
= control target key end

     0   :  { %s1897_s12 = smov 0   ;;  %s1899_s13 = smov 0   ;;  %s2166_s0 = inlined_call_operand.vmem [shape: bf16[512,512], index: 0, kind: input, shape index: {}]   ;;  %s2167_s1 = inlined_call_operand.vmem [shape: bf16[512,128], index: 1, kind: input, shape index: {}]   ;;  %s2168_s2 = inlined_call_operand.vmem [shape: f32[1,128], index: 2, kind: input, shape index: {}]   ;;  %s2169_s3 = inlined_call_operand.vmem [shape: bf16[512,128], index: 3, kind: output, shape index: {}]  }
   0x1   :  { %s1901_s14 = smov 0   ;;  %s1903_s15 = smov 0  }
   0x2   :  { %s1905_s16 = smov 0   ;;  %s1907_s17 = smov 0  }
   0x3   :  { %s1909_s18 = smov 0  }
   0x4 LB: > { %s22_s19 = sadd.s32 1, %s1866_s16  ;;  %s25_s20 = sadd.s32 1, %s1870_s17  ;;  %s1874_s18 = sphi %s1909_s18, %s13_s18   ;;  %s1870_s17 = sphi %s1907_s17, %s2175_s17   ;;  %s1866_s16 = sphi %s1905_s16, %s2174_s16   ;;  %s1862_s15 = sphi %s1903_s15, %s2173_s15   ;;  %s1858_s14 = sphi %s1901_s14, %s2172_s14   ;;  %s1854_s13 = sphi %s1899_s13, %s2171_s13   ;;  %s1850_s12 = sphi %s1897_s12, %s2170_s12  }
   0x5   : > { %p23_p0 = scmp.ge.s32.totalorder %s22_s19, 2  ;;  %p41_p1 = scmp.ne.s32.totalorder %s1854_s13, %s1850_s12 }
   0x6   : > { %p42_p2 = scmp.eq.s32.totalorder %s1874_s18, 0  ;;  %s34_s24 = sadd.s32 1, %s1854_s13 }
   0x7   : > { %s2177_s19 = smov (%p23_p0, %s22_s19), 0  ;;  %s2179_s20 = smov (!%p23_p0, %s25_s20), %s1870_s17 }
   0x8   : > { %p43_p3 = por %p42_p2, %p41_p1  ;;  %p27_p4 = scmp.ge.s32.totalorder %s2179_s20, 2 }
   0x9   : > { %s30_s21 = ssub.s32 %s1866_s16, %s2177_s19  ;;  %p1346_p6 = scmp.ge.s32.totalorder %s1874_s18, 4 }
   0xa   : > { %s2181_s20 = smov (%p27_p4, %s2179_s20), 0 }
   0xb   : > { %s29_s22 = ssub.s32 %s1870_s17, %s2181_s20  ;;  %143 = sbr.rel (%p1346_p6) target bundleno = 39 (0x27), region = 20 }
   0xc   : > { %s31_s23 = sor.u32 %s30_s21, %s29_s22 }
   0xd   : > { %p32_p5 = scmp.eq.s32.totalorder %s31_s23, 0 }
   0xf   : > { %s1948_s25 = scalar_select %p32_p5, %s1854_s13, %s34_s24  }
  0x10   : > { %146 = sbr.rel (!%p43_p3) target bundleno = 39 (0x27), region = 24  ;;  %s148_s26 = sand.u32 (%p43_p3), 1, %s1854_s13  }
  0x11   : > { %s1349_s27 = sshll.u32 (%p43_p3), %s1866_s16, 1  ;;  %s1347_s28 = sshll.u32 (%p43_p3), %s148_s26, 8 }
  0x12   : > { %s1443_s29 = sshll.u32 (%p43_p3), %s1870_s17, 7  ;;  %s1962_s8 = scalar_lea.vmem (%p43_p3), [#allocation3], %s1347_s28 }
  0x13   : > { %s154_s30 = sadd.s32 (%p43_p3), %s1443_s29, %s1349_s27 }
  0x14   : > { %s1351_s4 = sshll.u32 (%p43_p3), %s154_s30, 2 }
  0x15   : > { %s1957_s7 = scalar_lea.vmem %s2166_s0, %s1351_s4 }
  0x16   : > { %v247_v0 = vld [vmem:[%s1957_s7] sm:$0xff]  ;;  %v249_v1 = vld [vmem:[%s1957_s7 + $0x10] sm:$0xff] }
  0x17   : > { %v251_v2 = vld [vmem:[%s1957_s7 + $0x20] sm:$0xff]  ;;  %248 = vst [vmem:[%s1962_s8] sm:$0xff] %v247_v0  ;;  %250 = vst [vmem:[%s1962_s8 + $0x8] sm:$0xff] %v249_v1  ;;  %v253_v3 = vld [vmem:[%s1957_s7 + $0x30] sm:$0xff] }
  0x18   : > { %252 = vst [vmem:[%s1962_s8 + $0x10] sm:$0xff] %v251_v2  ;;  %v255_v4 = vld [vmem:[%s1957_s7 + $0x40] sm:$0xff]  ;;  %v257_v5 = vld [vmem:[%s1957_s7 + $0x50] sm:$0xff]  ;;  %254 = vst [vmem:[%s1962_s8 + $0x18] sm:$0xff] %v253_v3 }
  0x19   : > { %256 = vst [vmem:[%s1962_s8 + $0x20] sm:$0xff] %v255_v4  ;;  %258 = vst [vmem:[%s1962_s8 + $0x28] sm:$0xff] %v257_v5  ;;  %v259_v6 = vld [vmem:[%s1957_s7 + $0x60] sm:$0xff]  ;;  %v261_v7 = vld [vmem:[%s1957_s7 + $0x70] sm:$0xff] }
  0x1a   : > { %v263_v8 = vld [vmem:[%s1957_s7 + $0x80] sm:$0xff]  ;;  %260 = vst [vmem:[%s1962_s8 + $0x30] sm:$0xff] %v259_v6  ;;  %262 = vst [vmem:[%s1962_s8 + $0x38] sm:$0xff] %v261_v7  ;;  %v265_v9 = vld [vmem:[%s1957_s7 + $0x90] sm:$0xff] }
  0x1b   : > { %264 = vst [vmem:[%s1962_s8 + $0x40] sm:$0xff] %v263_v8  ;;  %v267_v10 = vld [vmem:[%s1957_s7 + $0xa0] sm:$0xff]  ;;  %v269_v11 = vld [vmem:[%s1957_s7 + $0xb0] sm:$0xff]  ;;  %266 = vst [vmem:[%s1962_s8 + $0x48] sm:$0xff] %v265_v9 }
  0x1c   : > { %268 = vst [vmem:[%s1962_s8 + $0x50] sm:$0xff] %v267_v10  ;;  %270 = vst [vmem:[%s1962_s8 + $0x58] sm:$0xff] %v269_v11  ;;  %v271_v12 = vld [vmem:[%s1957_s7 + $0xc0] sm:$0xff]  ;;  %v273_v13 = vld [vmem:[%s1957_s7 + $0xd0] sm:$0xff] }
  0x1d   : > { %v275_v14 = vld [vmem:[%s1957_s7 + $0xe0] sm:$0xff]  ;;  %272 = vst [vmem:[%s1962_s8 + $0x60] sm:$0xff] %v271_v12  ;;  %274 = vst [vmem:[%s1962_s8 + $0x68] sm:$0xff] %v273_v13  ;;  %v277_v15 = vld [vmem:[%s1957_s7 + $0xf0] sm:$0xff] }
  0x1e   : > { %276 = vst [vmem:[%s1962_s8 + $0x70] sm:$0xff] %v275_v14  ;;  %v279_v16 = vld [vmem:[%s1957_s7 + $0x100] sm:$0xff]  ;;  %v281_v17 = vld [vmem:[%s1957_s7 + $0x110] sm:$0xff]  ;;  %278 = vst [vmem:[%s1962_s8 + $0x78] sm:$0xff] %v277_v15 }
  0x1f   : > { %280 = vst [vmem:[%s1962_s8 + $0x80] sm:$0xff] %v279_v16  ;;  %282 = vst [vmem:[%s1962_s8 + $0x88] sm:$0xff] %v281_v17  ;;  %v283_v18 = vld [vmem:[%s1957_s7 + $0x120] sm:$0xff]  ;;  %v285_v19 = vld [vmem:[%s1957_s7 + $0x130] sm:$0xff] }
  0x20   : > { %v287_v20 = vld [vmem:[%s1957_s7 + $0x140] sm:$0xff]  ;;  %284 = vst [vmem:[%s1962_s8 + $0x90] sm:$0xff] %v283_v18  ;;  %286 = vst [vmem:[%s1962_s8 + $0x98] sm:$0xff] %v285_v19  ;;  %v289_v21 = vld [vmem:[%s1957_s7 + $0x150] sm:$0xff] }
  0x21   : > { %288 = vst [vmem:[%s1962_s8 + $0xa0] sm:$0xff] %v287_v20  ;;  %v291_v22 = vld [vmem:[%s1957_s7 + $0x160] sm:$0xff]  ;;  %v293_v23 = vld [vmem:[%s1957_s7 + $0x170] sm:$0xff]  ;;  %290 = vst [vmem:[%s1962_s8 + $0xa8] sm:$0xff] %v289_v21 }
  0x22   : > { %292 = vst [vmem:[%s1962_s8 + $0xb0] sm:$0xff] %v291_v22  ;;  %294 = vst [vmem:[%s1962_s8 + $0xb8] sm:$0xff] %v293_v23  ;;  %v295_v24 = vld [vmem:[%s1957_s7 + $0x180] sm:$0xff]  ;;  %v297_v25 = vld [vmem:[%s1957_s7 + $0x190] sm:$0xff] }
  0x23   : > { %v299_v26 = vld [vmem:[%s1957_s7 + $0x1a0] sm:$0xff]  ;;  %296 = vst [vmem:[%s1962_s8 + $0xc0] sm:$0xff] %v295_v24  ;;  %298 = vst [vmem:[%s1962_s8 + $0xc8] sm:$0xff] %v297_v25  ;;  %v301_v27 = vld [vmem:[%s1957_s7 + $0x1b0] sm:$0xff] }
  0x24   : > { %300 = vst [vmem:[%s1962_s8 + $0xd0] sm:$0xff] %v299_v26  ;;  %v303_v28 = vld [vmem:[%s1957_s7 + $0x1c0] sm:$0xff]  ;;  %v305_v29 = vld [vmem:[%s1957_s7 + $0x1d0] sm:$0xff]  ;;  %302 = vst [vmem:[%s1962_s8 + $0xd8] sm:$0xff] %v301_v27 }
  0x25   : > { %304 = vst [vmem:[%s1962_s8 + $0xe0] sm:$0xff] %v303_v28  ;;  %306 = vst [vmem:[%s1962_s8 + $0xe8] sm:$0xff] %v305_v29  ;;  %v307_v30 = vld [vmem:[%s1957_s7 + $0x1e0] sm:$0xff]  ;;  %v309_v31 = vld [vmem:[%s1957_s7 + $0x1f0] sm:$0xff] }
  0x26   : > { %308 = vst [vmem:[%s1962_s8 + $0xf0] sm:$0xff] %v307_v30  ;;  %310 = vst [vmem:[%s1962_s8 + $0xf8] sm:$0xff] %v309_v31 }
  0x27 PF: > { %p1352_p7 = scmp.ge.s32.totalorder %s1874_s18, 1  ;;  %p324_p8 = scmp.lt.s32.totalorder %s1874_s18, 5 }
  0x29   : > { %p325_p9 = pnand %p1352_p7, %p324_p8 }
  0x2a   : > { %s331_s9 = sand.u32 (!%p325_p9), 1, %s1850_s12   ;;  %s1354_s10 = sshll.u32 (!%p325_p9), %s1858_s14, 5 }
  0x2b   : > { %328 = sbr.rel (%p325_p9) target bundleno = 392 (0x188), region = 66  ;;  %s1353_s11 = sshll.u32 (!%p325_p9), %s331_s9, 8 }
  0x2c   : > { %p362_p10 = scmp.lt.s32.totalorder (!%p325_p9), %s1354_s10, 63  ;;  %s1356_s21 = sshll.u32 (!%p325_p9), %s1862_s15, 5 }
  0x2d   : > { %p368_p11 = scmp.lt.s32.totalorder (!%p325_p9), %s1356_s21, 63  ;;  %s2040_s12 = scalar_lea.vmem (!%p325_p9), [#allocation3], %s1353_s11 }
  0x2e   : > { %p1358_p12 = scmp.ne.s32.totalorder (!%p325_p9), %s1858_s14, 0 }
  0x30   : > { %s2183_s10 = smov (!%p362_p10, %s1354_s10), 63  ;;  %s2185_s21 = smov (!%p368_p11, %s1356_s21), 63 }
  0x31   : > { %s1355_s22 = sshll.u32 %s2183_s10, 2  ;;  %s1357_s27 = sshll.u32 %s2185_s21, 2 }
  0x32   : > { %s2033_s26 = scalar_lea.vmem %s2167_s1, %s1355_s22  ;;  %s2038_s30 = scalar_lea.vmem %s2169_s3, %s1357_s27 }
  0x33   : > { %377 = sbr.rel (%p1358_p12) target bundleno = 73 (0x49), region = 74 }
  0x38   : > { %v1876_v32 = vmov 0.0  }
  0x39   : > { %378 = vst [vmem:[#allocation2 + $0xb0] sm:$0xff] %v1876_v32  ;;  %379 = vst [vmem:[#allocation2] sm:$0xff] %v1876_v32 }
  0x3a   : > { %380 = vst [vmem:[#allocation2 + $0xd8] sm:$0xff] %v1876_v32  ;;  %381 = vst [vmem:[#allocation2 + $0x18] sm:$0xff] %v1876_v32 }
  0x3b   : > { %382 = vst [vmem:[#allocation2 + $0x50] sm:$0xff] %v1876_v32  ;;  %383 = vst [vmem:[#allocation2 + $0x68] sm:$0xff] %v1876_v32 }
  0x3c   : > { %384 = vst [vmem:[#allocation2 + $0x30] sm:$0xff] %v1876_v32  ;;  %385 = vst [vmem:[#allocation2 + $0x48] sm:$0xff] %v1876_v32 }
  0x3d   : > { %386 = vst [vmem:[#allocation2 + $0x80] sm:$0xff] %v1876_v32  ;;  %387 = vst [vmem:[#allocation2 + $0x88] sm:$0xff] %v1876_v32 }
  0x3e   : > { %388 = vst [vmem:[#allocation2 + $0xe8] sm:$0xff] %v1876_v32  ;;  %389 = vst [vmem:[#allocation2 + $0xb8] sm:$0xff] %v1876_v32 }
  0x3f   : > { %390 = vst [vmem:[#allocation2 + $0x60] sm:$0xff] %v1876_v32  ;;  %391 = vst [vmem:[#allocation2 + $0xf0] sm:$0xff] %v1876_v32 }
  0x40   : > { %392 = vst [vmem:[#allocation2 + $0x8] sm:$0xff] %v1876_v32  ;;  %393 = vst [vmem:[#allocation2 + $0x78] sm:$0xff] %v1876_v32 }
  0x41   : > { %394 = vst [vmem:[#allocation2 + $0x38] sm:$0xff] %v1876_v32  ;;  %395 = vst [vmem:[#allocation2 + $0x58] sm:$0xff] %v1876_v32 }
  0x42   : > { %396 = vst [vmem:[#allocation2 + $0x40] sm:$0xff] %v1876_v32  ;;  %397 = vst [vmem:[#allocation2 + $0xc8] sm:$0xff] %v1876_v32 }
  0x43   : > { %398 = vst [vmem:[#allocation2 + $0xe0] sm:$0xff] %v1876_v32  ;;  %399 = vst [vmem:[#allocation2 + $0x90] sm:$0xff] %v1876_v32 }
  0x44   : > { %400 = vst [vmem:[#allocation2 + $0x70] sm:$0xff] %v1876_v32  ;;  %401 = vst [vmem:[#allocation2 + $0xc0] sm:$0xff] %v1876_v32 }
  0x45   : > { %402 = vst [vmem:[#allocation2 + $0xa8] sm:$0xff] %v1876_v32  ;;  %403 = vst [vmem:[#allocation2 + $0xd0] sm:$0xff] %v1876_v32 }
  0x46   : > { %404 = vst [vmem:[#allocation2 + $0x10] sm:$0xff] %v1876_v32  ;;  %405 = vst [vmem:[#allocation2 + $0x28] sm:$0xff] %v1876_v32 }
  0x47   : > { %406 = vst [vmem:[#allocation2 + $0xa0] sm:$0xff] %v1876_v32  ;;  %407 = vst [vmem:[#allocation2 + $0xf8] sm:$0xff] %v1876_v32 }
  0x48   : > { %408 = vst [vmem:[#allocation2 + $0x20] sm:$0xff] %v1876_v32  ;;  %409 = vst [vmem:[#allocation2 + $0x98] sm:$0xff] %v1876_v32 }
  0x49 PF: > { %v1756_v33 = vld [vmem:[%s2033_s26 + $0x78] sm:$0xff]   ;;  %v1758_v35 = vld [vmem:[%s2033_s26 + $0x70] sm:$0xff]   ;;  %v1760_v37 = vld [vmem:[%s2033_s26 + $0x68] sm:$0xff]   ;;  %p1407_p13 = scmp.ne.s32.totalorder %s1858_s14, 1 }
  0x4a   : > { %v1757_v34 = vld [vmem:[%s2033_s26 + $0x38] sm:$0xff]   ;;  %1571 = vmatprep.subr.bf16.mxu0 %v1756_v33  ;;  %1683 = vmatprep.subr.bf16.mxu1 %v1756_v33  ;;  %v1759_v36 = vld [vmem:[%s2033_s26 + $0x30] sm:$0xff]   ;;  %v1761_v38 = vld [vmem:[%s2033_s26 + $0x28] sm:$0xff]  }
  0x4b   : > { %1572 = vmatpush3.bf16.msra.mxu0 %v1757_v34  ;;  %1691 = vmatpush3.bf16.msra.mxu1 %v1757_v34  ;;  %v1762_v39 = vld [vmem:[%s2033_s26 + $0x60] sm:$0xff]   ;;  %v1764_v41 = vld [vmem:[%s2033_s26 + $0x58] sm:$0xff]   ;;  %v1766_v43 = vld [vmem:[%s2033_s26 + $0x50] sm:$0xff]  }
  0x4c   : > { %1573 = vmatprep.subr.bf16.mxu0 %v1758_v35  ;;  %1684 = vmatprep.subr.bf16.mxu1 %v1758_v35  ;;  %v1763_v40 = vld [vmem:[%s2033_s26 + $0x20] sm:$0xff]   ;;  %v1765_v42 = vld [vmem:[%s2033_s26 + $0x18] sm:$0xff]   ;;  %v1767_v46 = vld [vmem:[%s2033_s26 + $0x10] sm:$0xff]  }
  0x4d   : > { %v1774_v44 = vld [vmem:[%s2040_s12 + $0x4] ss:$8 sps:$4 sm:$0xff]   ;;  %v1772_v51 = vld [vmem:[%s2040_s12] ss:$8 sps:$4 sm:$0xff]   ;;  %v1778_v53 = vld [vmem:[%s2040_s12 + $0x14] ss:$8 sps:$4 sm:$0xff]  }
  0x4e   : > { %v1777_v45 = vld [vmem:[%s2040_s12 + $0x84] ss:$8 sps:$4 sm:$0xff]   ;;  %794 = vmatprep.mubr.bf16.mxu0 %v1774_v44  ;;  %v1775_v52 = vld [vmem:[%s2040_s12 + $0x80] ss:$8 sps:$4 sm:$0xff]   ;;  %v1780_v54 = vld [vmem:[%s2040_s12 + $0x94] ss:$8 sps:$4 sm:$0xff]  }
  0x4f   : > { %1574 = vmatpush3.bf16.msra.mxu0 %v1759_v36  ;;  %1692 = vmatpush3.bf16.msra.mxu1 %v1759_v36  ;;  %v1768_v47 = vld [vmem:[%s2033_s26 + $0x48] sm:$0xff]   ;;  %v1770_v49 = vld [vmem:[%s2033_s26 + $0x40] sm:$0xff]   ;;  %v1782_v55 = vld [vmem:[%s2040_s12 + $0x10] ss:$8 sps:$4 sm:$0xff]  }
  0x50   : > { %1575 = vmatprep.subr.bf16.mxu0 %v1760_v37  ;;  %1685 = vmatprep.subr.bf16.mxu1 %v1760_v37  ;;  %v1769_v48 = vld [vmem:[%s2033_s26 + $0x8] sm:$0xff]   ;;  %v1771_v50 = vld [vmem:[%s2033_s26] sm:$0xff]   ;;  %v1783_v56 = vld [vmem:[%s2040_s12 + $0x90] ss:$8 sps:$4 sm:$0xff]  }
  0x51   : > { %858 = vmatprep.mubr.bf16.mxu1 %v1777_v45  ;;  %v1784_v57 = vld [vmem:[%s2040_s12 + $0x24] ss:$8 sps:$4 sm:$0xff]   ;;  %v1788_v59 = vld [vmem:[%s2040_s12 + $0x20] ss:$8 sps:$4 sm:$0xff]   ;;  %v1790_v61 = vld [vmem:[%s2040_s12 + $0x34] ss:$8 sps:$4 sm:$0xff]  }
  0x52   : > { %v1786_v58 = vld [vmem:[%s2040_s12 + $0xa4] ss:$8 sps:$4 sm:$0xff]   ;;  %v1789_v60 = vld [vmem:[%s2040_s12 + $0xa0] ss:$8 sps:$4 sm:$0xff]   ;;  %v1792_v62 = vld [vmem:[%s2040_s12 + $0xb4] ss:$8 sps:$4 sm:$0xff]  }
  0x53   : > { %1576 = vmatpush3.bf16.msra.mxu0 %v1761_v38  ;;  %1693 = vmatpush3.bf16.msra.mxu1 %v1761_v38  ;;  %v1794_v63 = vld [vmem:[%s2040_s12 + $0x30] ss:$8 sps:$4 sm:$0xff]   ;;  %v1796_v1 = vld [vmem:[%s2040_s12 + $0x44] ss:$8 sps:$4 sm:$0xff]   ;;  %v1800_v3 = vld [vmem:[%s2040_s12 + $0x40] ss:$8 sps:$4 sm:$0xff]  }
  0x54   : > { %1577 = vmatprep.subr.bf16.mxu0 %v1762_v39  ;;  %1686 = vmatprep.subr.bf16.mxu1 %v1762_v39  ;;  %v1795_v0 = vld [vmem:[%s2040_s12 + $0xb0] ss:$8 sps:$4 sm:$0xff]   ;;  %v1798_v2 = vld [vmem:[%s2040_s12 + $0xc4] ss:$8 sps:$4 sm:$0xff]   ;;  %v1801_v4 = vld [vmem:[%s2040_s12 + $0xc0] ss:$8 sps:$4 sm:$0xff]  }
  0x55   : > { %v1802_v5 = vld [vmem:[%s2040_s12 + $0x54] ss:$8 sps:$4 sm:$0xff]   ;;  %v1806_v7 = vld [vmem:[%s2040_s12 + $0x50] ss:$8 sps:$4 sm:$0xff]   ;;  %v1808_v9 = vld [vmem:[%s2040_s12 + $0x64] ss:$8 sps:$4 sm:$0xff]  }
  0x56   : > { %v1804_v6 = vld [vmem:[%s2040_s12 + $0xd4] ss:$8 sps:$4 sm:$0xff]   ;;  %v1807_v8 = vld [vmem:[%s2040_s12 + $0xd0] ss:$8 sps:$4 sm:$0xff]   ;;  %v1810_v10 = vld [vmem:[%s2040_s12 + $0xe4] ss:$8 sps:$4 sm:$0xff]  }
  0x57   : > { %1578 = vmatpush3.bf16.msra.mxu0 %v1763_v40  ;;  %1694 = vmatpush3.bf16.msra.mxu1 %v1763_v40  ;;  %v1812_v11 = vld [vmem:[%s2040_s12 + $0x60] ss:$8 sps:$4 sm:$0xff]   ;;  %v1814_v13 = vld [vmem:[%s2040_s12 + $0x74] ss:$8 sps:$4 sm:$0xff]   ;;  %v1818_v15 = vld [vmem:[%s2040_s12 + $0x70] ss:$8 sps:$4 sm:$0xff]  }
  0x58   : > { %1579 = vmatprep.subr.bf16.mxu0 %v1764_v41  ;;  %1687 = vmatprep.subr.bf16.mxu1 %v1764_v41  ;;  %v1813_v12 = vld [vmem:[%s2040_s12 + $0xe0] ss:$8 sps:$4 sm:$0xff]   ;;  %v1816_v14 = vld [vmem:[%s2040_s12 + $0xf4] ss:$8 sps:$4 sm:$0xff]   ;;  %v1819_v16 = vld [vmem:[%s2040_s12 + $0xf0] ss:$8 sps:$4 sm:$0xff]  }
  0x59   : > { %v410_v19 = vld [vmem:[#allocation2 + $0xb0] sm:$0xff]  ;;  %v426_v21 = vld [vmem:[#allocation2 + $0x38] sm:$0xff]  ;;  %v411_v29 = vld [vmem:[#allocation2] sm:$0xff] }
  0x5a   : > { %v427_v31 = vld [vmem:[#allocation2 + $0x58] sm:$0xff]  ;;  %v428_v41 = vld [vmem:[#allocation2 + $0x40] sm:$0xff] }
  0x5b   : > { %1580 = vmatpush3.bf16.msra.mxu0 %v1765_v42  ;;  %1695 = vmatpush3.bf16.msra.mxu1 %v1765_v42  ;;  %v412_v39 = vld [vmem:[#allocation2 + $0xd8] sm:$0xff] }
  0x5c   : > { %1581 = vmatprep.subr.bf16.mxu0 %v1766_v43  ;;  %1688 = vmatprep.subr.bf16.mxu1 %v1766_v43 }
  0x5f   : > { %1582 = vmatpush3.bf16.msra.mxu0 %v1767_v46  ;;  %1696 = vmatpush3.bf16.msra.mxu1 %v1767_v46 }
  0x60   : > { %1583 = vmatprep.subr.bf16.mxu0 %v1768_v47  ;;  %1689 = vmatprep.subr.bf16.mxu1 %v1768_v47 }
  0x63   : > { %1584 = vmatpush3.bf16.msra.mxu0 %v1769_v48  ;;  %1697 = vmatpush3.bf16.msra.mxu1 %v1769_v48 }
  0x64   : > { %1585 = vmatprep.subr.bf16.mxu0 %v1770_v49  ;;  %1690 = vmatprep.subr.bf16.mxu1 %v1770_v49  ;;  %v413_v49 = vld [vmem:[#allocation2 + $0x18] sm:$0xff] }
  0x67   : > { %1586 = vmatpush3.bf16.msra.mxu0 %v1771_v50  ;;  %1698 = vmatpush3.bf16.msra.mxu1 %v1771_v50 }
  0x6a   : > { %795 = vmatmul.mubr.bf16.vlgmr.msra.gmra.mxu0 %v1772_v51  ;;  %859 = vmatmul.mubr.bf16.vlgmr.msra.gmra.mxu1 %v1775_v52  ;;  %v429_v51 = vld [vmem:[#allocation2 + $0xc8] sm:$0xff] }
  0x6b   : > { %802 = vmatprep.mubr.bf16.mxu0 %v1778_v53  ;;  %866 = vmatprep.mubr.bf16.mxu1 %v1780_v54 }
  0x72   : > { %803 = vmatmul.mubr.bf16.gmra.mxu0 %v1782_v55  ;;  %867 = vmatmul.mubr.bf16.gmra.mxu1 %v1783_v56 }
  0x73   : > { %810 = vmatprep.mubr.bf16.mxu0 %v1784_v57  ;;  %874 = vmatprep.mubr.bf16.mxu1 %v1786_v58 }
  0x7a   : > { %811 = vmatmul.mubr.bf16.gmra.mxu0 %v1788_v59  ;;  %875 = vmatmul.mubr.bf16.gmra.mxu1 %v1789_v60  ;;  %v414_v59 = vld [vmem:[#allocation2 + $0x50] sm:$0xff] }
  0x7b   : > { %818 = vmatprep.mubr.bf16.mxu0 %v1790_v61  ;;  %882 = vmatprep.mubr.bf16.mxu1 %v1792_v62  ;;  %v430_v61 = vld [vmem:[#allocation2 + $0xe0] sm:$0xff] }
  0x82   : > { %819 = vmatmul.mubr.bf16.gmra.mxu0 %v1794_v63  ;;  %883 = vmatmul.mubr.bf16.gmra.mxu1 %v1795_v0 }
  0x83   : > { %826 = vmatprep.mubr.bf16.mxu0 %v1796_v1  ;;  %890 = vmatprep.mubr.bf16.mxu1 %v1798_v2 }
  0x8a   : > { %827 = vmatmul.mubr.bf16.gmra.mxu0 %v1800_v3  ;;  %891 = vmatmul.mubr.bf16.gmra.mxu1 %v1801_v4 }
  0x8b   : > { %834 = vmatprep.mubr.bf16.mxu0 %v1802_v5  ;;  %898 = vmatprep.mubr.bf16.mxu1 %v1804_v6  ;;  %v415_v5 = vld [vmem:[#allocation2 + $0x68] sm:$0xff] }
  0x92   : > { %835 = vmatmul.mubr.bf16.gmra.mxu0 %v1806_v7  ;;  %899 = vmatmul.mubr.bf16.gmra.mxu1 %v1807_v8  ;;  %v431_v7 = vld [vmem:[#allocation2 + $0x90] sm:$0xff] }
  0x93   : > { %842 = vmatprep.mubr.bf16.mxu0 %v1808_v9  ;;  %906 = vmatprep.mubr.bf16.mxu1 %v1810_v10 }
  0x9a   : > { %843 = vmatmul.mubr.bf16.gmra.mxu0 %v1812_v11  ;;  %907 = vmatmul.mubr.bf16.gmra.mxu1 %v1813_v12 }
  0x9b   : > { %850 = vmatprep.mubr.bf16.mxu0 %v1814_v13  ;;  %914 = vmatprep.mubr.bf16.mxu1 %v1816_v14 }
  0xa2   : > { %851 = vmatmul.mubr.bf16.gmra.mxu0 %v1818_v15  ;;  %915 = vmatmul.mubr.bf16.gmra.mxu1 %v1819_v16  ;;  %v416_v15 = vld [vmem:[#allocation2 + $0x30] sm:$0xff] }
 0x12a   : > { %v1587_v17 = vpop.f32.mrf.mxu0  ;;  %v1635_v18 = vpop.f32.mrf.mxu1 }
 0x12c   : > { %v1588_v20 = vpop.f32.mrf.mxu0  ;;  %v1636_v22 = vpop.f32.mrf.mxu1 }
 0x12d   : > { %v1589_v23 = vadd.f32 %v1588_v20, %v1587_v17  ;;  %v1637_v24 = vadd.f32 %v1636_v22, %v1635_v18  ;;  %v432_v17 = vld [vmem:[#allocation2 + $0x70] sm:$0xff] }
 0x12e   : > { %v1590_v25 = vpop.f32.mrf.mxu0  ;;  %v1638_v26 = vpop.f32.mrf.mxu1 }
 0x12f   : > { %v923_v27 = vadd.f32 %v1589_v23, %v410_v19  ;;  %v939_v28 = vadd.f32 %v1637_v24, %v426_v21 }
 0x130   : > { %v1591_v30 = vpop.f32.mrf.mxu0  ;;  %v1639_v32 = vpop.f32.mrf.mxu1 }
 0x131   : > { %955 = vst [vmem:[#allocation2 + $0xb0] sm:$0xff] %v923_v27  ;;  %971 = vst [vmem:[#allocation2 + $0x38] sm:$0xff] %v939_v28  ;;  %v1592_v33 = vadd.f32 %v1591_v30, %v1590_v25  ;;  %v1640_v34 = vadd.f32 %v1639_v32, %v1638_v26  ;;  %v417_v25 = vld [vmem:[#allocation2 + $0x48] sm:$0xff]  ;;  %v433_v27 = vld [vmem:[#allocation2 + $0xc0] sm:$0xff] }
 0x132   : > { %v1593_v35 = vpop.f32.mrf.mxu0  ;;  %v1641_v36 = vpop.f32.mrf.mxu1 }
 0x133   : > { %v924_v37 = vadd.f32 %v1592_v33, %v411_v29  ;;  %v940_v38 = vadd.f32 %v1640_v34, %v427_v31 }
 0x134   : > { %v1594_v40 = vpop.f32.mrf.mxu0  ;;  %v1642_v42 = vpop.f32.mrf.mxu1 }
 0x135   : > { %956 = vst [vmem:[#allocation2] sm:$0xff] %v924_v37  ;;  %972 = vst [vmem:[#allocation2 + $0x58] sm:$0xff] %v940_v38  ;;  %v1595_v43 = vadd.f32 %v1594_v40, %v1593_v35  ;;  %v1643_v44 = vadd.f32 %v1642_v42, %v1641_v36  ;;  %v418_v35 = vld [vmem:[#allocation2 + $0x80] sm:$0xff]  ;;  %v434_v37 = vld [vmem:[#allocation2 + $0xa8] sm:$0xff] }
 0x136   : > { %v1596_v45 = vpop.f32.mrf.mxu0  ;;  %v1644_v46 = vpop.f32.mrf.mxu1 }
 0x137   : > { %v925_v47 = vadd.f32 %v1595_v43, %v412_v39  ;;  %v941_v48 = vadd.f32 %v1643_v44, %v428_v41 }
 0x138   : > { %v1597_v50 = vpop.f32.mrf.mxu0  ;;  %v1645_v52 = vpop.f32.mrf.mxu1 }
 0x139   : > { %957 = vst [vmem:[#allocation2 + $0xd8] sm:$0xff] %v925_v47  ;;  %973 = vst [vmem:[#allocation2 + $0x40] sm:$0xff] %v941_v48  ;;  %v1598_v53 = vadd.f32 %v1597_v50, %v1596_v45  ;;  %v1646_v54 = vadd.f32 %v1645_v52, %v1644_v46  ;;  %v419_v45 = vld [vmem:[#allocation2 + $0x88] sm:$0xff]  ;;  %v435_v47 = vld [vmem:[#allocation2 + $0xd0] sm:$0xff] }
 0x13a   : > { %v1599_v55 = vpop.f32.mrf.mxu0  ;;  %v1647_v56 = vpop.f32.mrf.mxu1 }
 0x13b   : > { %v926_v57 = vadd.f32 %v1598_v53, %v413_v49  ;;  %v942_v58 = vadd.f32 %v1646_v54, %v429_v51 }
 0x13c   : > { %v1600_v60 = vpop.f32.mrf.mxu0  ;;  %v1648_v62 = vpop.f32.mrf.mxu1 }
 0x13d   : > { %958 = vst [vmem:[#allocation2 + $0x18] sm:$0xff] %v926_v57  ;;  %974 = vst [vmem:[#allocation2 + $0xc8] sm:$0xff] %v942_v58  ;;  %v1601_v63 = vadd.f32 %v1600_v60, %v1599_v55  ;;  %v1649_v0 = vadd.f32 %v1648_v62, %v1647_v56  ;;  %v420_v55 = vld [vmem:[#allocation2 + $0xe8] sm:$0xff]  ;;  %v436_v57 = vld [vmem:[#allocation2 + $0x10] sm:$0xff] }
 0x13e   : > { %v1602_v1 = vpop.f32.mrf.mxu0  ;;  %v1650_v2 = vpop.f32.mrf.mxu1 }
 0x13f   : > { %v927_v3 = vadd.f32 %v1601_v63, %v414_v59  ;;  %v943_v4 = vadd.f32 %v1649_v0, %v430_v61 }
 0x140   : > { %v1603_v6 = vpop.f32.mrf.mxu0  ;;  %v1651_v8 = vpop.f32.mrf.mxu1 }
 0x141   : > { %959 = vst [vmem:[#allocation2 + $0x50] sm:$0xff] %v927_v3  ;;  %975 = vst [vmem:[#allocation2 + $0xe0] sm:$0xff] %v943_v4  ;;  %v1604_v9 = vadd.f32 %v1603_v6, %v1602_v1  ;;  %v1652_v10 = vadd.f32 %v1651_v8, %v1650_v2  ;;  %v421_v1 = vld [vmem:[#allocation2 + $0xb8] sm:$0xff]  ;;  %v437_v3 = vld [vmem:[#allocation2 + $0x28] sm:$0xff] }
 0x142   : > { %v1605_v11 = vpop.f32.mrf.mxu0  ;;  %v1653_v12 = vpop.f32.mrf.mxu1 }
 0x143   : > { %v928_v13 = vadd.f32 %v1604_v9, %v415_v5  ;;  %v944_v14 = vadd.f32 %v1652_v10, %v431_v7 }
 0x144   : > { %v1606_v16 = vpop.f32.mrf.mxu0  ;;  %v1654_v18 = vpop.f32.mrf.mxu1 }
 0x145   : > { %960 = vst [vmem:[#allocation2 + $0x68] sm:$0xff] %v928_v13  ;;  %976 = vst [vmem:[#allocation2 + $0x90] sm:$0xff] %v944_v14  ;;  %v1607_v19 = vadd.f32 %v1606_v16, %v1605_v11  ;;  %v1655_v20 = vadd.f32 %v1654_v18, %v1653_v12  ;;  %v422_v11 = vld [vmem:[#allocation2 + $0x60] sm:$0xff] }
 0x146   : > { %v1608_v21 = vpop.f32.mrf.mxu0  ;;  %v1656_v22 = vpop.f32.mrf.mxu1  ;;  %v438_v13 = vld [vmem:[#allocation2 + $0xa0] sm:$0xff] }
 0x147   : > { %v929_v23 = vadd.f32 %v1607_v19, %v416_v15  ;;  %v945_v24 = vadd.f32 %v1655_v20, %v432_v17 }
 0x148   : > { %v1609_v26 = vpop.f32.mrf.mxu0  ;;  %v1657_v28 = vpop.f32.mrf.mxu1 }
 0x149   : > { %961 = vst [vmem:[#allocation2 + $0x30] sm:$0xff] %v929_v23  ;;  %977 = vst [vmem:[#allocation2 + $0x70] sm:$0xff] %v945_v24  ;;  %v1610_v29 = vadd.f32 %v1609_v26, %v1608_v21  ;;  %v1658_v30 = vadd.f32 %v1657_v28, %v1656_v22  ;;  %v423_v21 = vld [vmem:[#allocation2 + $0xf0] sm:$0xff]  ;;  %v439_v23 = vld [vmem:[#allocation2 + $0xf8] sm:$0xff] }
 0x14a   : > { %v1611_v31 = vpop.f32.mrf.mxu0  ;;  %v1659_v32 = vpop.f32.mrf.mxu1 }
 0x14b   : > { %v930_v33 = vadd.f32 %v1610_v29, %v417_v25  ;;  %v946_v34 = vadd.f32 %v1658_v30, %v433_v27 }
 0x14c   : > { %v1612_v36 = vpop.f32.mrf.mxu0  ;;  %v1660_v38 = vpop.f32.mrf.mxu1 }
 0x14d   : > { %962 = vst [vmem:[#allocation2 + $0x48] sm:$0xff] %v930_v33  ;;  %978 = vst [vmem:[#allocation2 + $0xc0] sm:$0xff] %v946_v34  ;;  %v1613_v39 = vadd.f32 %v1612_v36, %v1611_v31  ;;  %v1661_v40 = vadd.f32 %v1660_v38, %v1659_v32  ;;  %v424_v31 = vld [vmem:[#allocation2 + $0x8] sm:$0xff]  ;;  %v440_v33 = vld [vmem:[#allocation2 + $0x20] sm:$0xff] }
 0x14e   : > { %v1614_v41 = vpop.f32.mrf.mxu0  ;;  %v1662_v42 = vpop.f32.mrf.mxu1 }
 0x14f   : > { %v931_v43 = vadd.f32 %v1613_v39, %v418_v35  ;;  %v947_v44 = vadd.f32 %v1661_v40, %v434_v37 }
 0x150   : > { %v1615_v46 = vpop.f32.mrf.mxu0  ;;  %v1663_v48 = vpop.f32.mrf.mxu1 }
 0x151   : > { %963 = vst [vmem:[#allocation2 + $0x80] sm:$0xff] %v931_v43  ;;  %979 = vst [vmem:[#allocation2 + $0xa8] sm:$0xff] %v947_v44  ;;  %v1616_v49 = vadd.f32 %v1615_v46, %v1614_v41  ;;  %v1664_v50 = vadd.f32 %v1663_v48, %v1662_v42  ;;  %v425_v41 = vld [vmem:[#allocation2 + $0x78] sm:$0xff] }
 0x152   : > { %v1617_v51 = vpop.f32.mrf.mxu0  ;;  %v1665_v52 = vpop.f32.mrf.mxu1  ;;  %v441_v43 = vld [vmem:[#allocation2 + $0x98] sm:$0xff] }
 0x153   : > { %v932_v53 = vadd.f32 %v1616_v49, %v419_v45  ;;  %v948_v54 = vadd.f32 %v1664_v50, %v435_v47 }
 0x154   : > { %v1618_v56 = vpop.f32.mrf.mxu0  ;;  %v1666_v58 = vpop.f32.mrf.mxu1 }
 0x155   : > { %964 = vst [vmem:[#allocation2 + $0x88] sm:$0xff] %v932_v53  ;;  %980 = vst [vmem:[#allocation2 + $0xd0] sm:$0xff] %v948_v54  ;;  %v1619_v59 = vadd.f32 %v1618_v56, %v1617_v51  ;;  %v1667_v60 = vadd.f32 %v1666_v58, %v1665_v52 }
 0x156   : > { %v1620_v61 = vpop.f32.mrf.mxu0  ;;  %v1668_v62 = vpop.f32.mrf.mxu1 }
 0x157   : > { %v933_v63 = vadd.f32 %v1619_v59, %v420_v55  ;;  %v949_v0 = vadd.f32 %v1667_v60, %v436_v57 }
 0x158   : > { %v1621_v2 = vpop.f32.mrf.mxu0  ;;  %v1669_v4 = vpop.f32.mrf.mxu1 }
 0x159   : > { %965 = vst [vmem:[#allocation2 + $0xe8] sm:$0xff] %v933_v63  ;;  %981 = vst [vmem:[#allocation2 + $0x10] sm:$0xff] %v949_v0  ;;  %v1622_v5 = vadd.f32 %v1621_v2, %v1620_v61  ;;  %v1670_v6 = vadd.f32 %v1669_v4, %v1668_v62 }
 0x15a   : > { %v1623_v7 = vpop.f32.mrf.mxu0  ;;  %v1671_v8 = vpop.f32.mrf.mxu1 }
 0x15b   : > { %v934_v9 = vadd.f32 %v1622_v5, %v421_v1  ;;  %v950_v10 = vadd.f32 %v1670_v6, %v437_v3 }
 0x15c   : > { %v1624_v12 = vpop.f32.mrf.mxu0  ;;  %v1672_v14 = vpop.f32.mrf.mxu1 }
 0x15d   : > { %966 = vst [vmem:[#allocation2 + $0xb8] sm:$0xff] %v934_v9  ;;  %982 = vst [vmem:[#allocation2 + $0x28] sm:$0xff] %v950_v10  ;;  %v1625_v15 = vadd.f32 %v1624_v12, %v1623_v7  ;;  %v1673_v16 = vadd.f32 %v1672_v14, %v1671_v8 }
 0x15e   : > { %v1626_v17 = vpop.f32.mrf.mxu0  ;;  %v1674_v18 = vpop.f32.mrf.mxu1 }
 0x15f   : > { %v935_v19 = vadd.f32 %v1625_v15, %v422_v11  ;;  %v951_v20 = vadd.f32 %v1673_v16, %v438_v13 }
 0x160   : > { %v1627_v22 = vpop.f32.mrf.mxu0  ;;  %v1675_v24 = vpop.f32.mrf.mxu1 }
 0x161   : > { %967 = vst [vmem:[#allocation2 + $0x60] sm:$0xff] %v935_v19  ;;  %983 = vst [vmem:[#allocation2 + $0xa0] sm:$0xff] %v951_v20  ;;  %v1628_v25 = vadd.f32 %v1627_v22, %v1626_v17  ;;  %v1676_v26 = vadd.f32 %v1675_v24, %v1674_v18 }
 0x162   : > { %v1629_v27 = vpop.f32.mrf.mxu0  ;;  %v1677_v28 = vpop.f32.mrf.mxu1 }
 0x163   : > { %v936_v29 = vadd.f32 %v1628_v25, %v423_v21  ;;  %v952_v30 = vadd.f32 %v1676_v26, %v439_v23 }
 0x164   : > { %v1630_v32 = vpop.f32.mrf.mxu0  ;;  %v1678_v34 = vpop.f32.mrf.mxu1 }
 0x165   : > { %968 = vst [vmem:[#allocation2 + $0xf0] sm:$0xff] %v936_v29  ;;  %984 = vst [vmem:[#allocation2 + $0xf8] sm:$0xff] %v952_v30  ;;  %v1631_v35 = vadd.f32 %v1630_v32, %v1629_v27  ;;  %v1679_v36 = vadd.f32 %v1678_v34, %v1677_v28 }
 0x166   : > { %v1632_v37 = vpop.f32.mrf.mxu0  ;;  %v1680_v38 = vpop.f32.mrf.mxu1 }
 0x167   : > { %v937_v39 = vadd.f32 %v1631_v35, %v424_v31  ;;  %v953_v40 = vadd.f32 %v1679_v36, %v440_v33 }
 0x168   : > { %v1633_v42 = vpop.f32.mrf.mxu0  ;;  %v1681_v44 = vpop.f32.mrf.mxu1 }
 0x169   : > { %969 = vst [vmem:[#allocation2 + $0x8] sm:$0xff] %v937_v39  ;;  %985 = vst [vmem:[#allocation2 + $0x20] sm:$0xff] %v953_v40  ;;  %v1634_v45 = vadd.f32 %v1633_v42, %v1632_v37  ;;  %v1682_v46 = vadd.f32 %v1681_v44, %v1680_v38  ;;  %990 = sbr.rel (%p1407_p13) target bundleno = 392 (0x188), region = 78 }
 0x16b   : > { %v938_v47 = vadd.f32 %v1634_v45, %v425_v41  ;;  %v954_v48 = vadd.f32 %v1682_v46, %v441_v43 }
 0x16d   : > { %970 = vst [vmem:[#allocation2 + $0x78] sm:$0xff] %v938_v47  ;;  %986 = vst [vmem:[#allocation2 + $0x98] sm:$0xff] %v954_v48 }
 0x16e   : > { %v991_v49 = vld [vmem:[#allocation2 + $0xb0] sm:$0xff]  ;;  %v992_v50 = vld [vmem:[#allocation2] sm:$0xff]  ;;  %v993_v54 = vld [vmem:[#allocation2 + $0xd8] sm:$0xff] }
 0x16f   : > { %v2095_v51 = vld [vmem:[%s2168_s2] ss:$0 sm:$0xff]  ;;  %v994_v55 = vld [vmem:[#allocation2 + $0x18] sm:$0xff]  ;;  %v995_v56 = vld [vmem:[#allocation2 + $0x50] sm:$0xff] }
 0x170   : > { %v1030_v52 = vadd.f32 %v2095_v51, %v991_v49  ;;  %v1031_v53 = vadd.f32 %v2095_v51, %v992_v50  ;;  %v1032_v57 = vadd.f32 %v2095_v51, %v993_v54  ;;  %v1033_v58 = vadd.f32 %v2095_v51, %v994_v55  ;;  %v996_v59 = vld [vmem:[#allocation2 + $0x68] sm:$0xff]  ;;  %v997_v61 = vld [vmem:[#allocation2 + $0x30] sm:$0xff]  ;;  %v999_v3 = vld [vmem:[#allocation2 + $0x80] sm:$0xff] }
 0x171   : > { %v1034_v60 = vadd.f32 %v2095_v51, %v995_v56  ;;  %v998_v62 = vld [vmem:[#allocation2 + $0x48] sm:$0xff]  ;;  %v1035_v1 = vadd.f32 %v2095_v51, %v996_v59  ;;  %v1036_v2 = vadd.f32 %v2095_v51, %v997_v61  ;;  %v1002_v10 = vld [vmem:[#allocation2 + $0xb8] sm:$0xff]  ;;  %v1003_v11 = vld [vmem:[#allocation2 + $0x60] sm:$0xff]  ;;  %v1038_v15 = vadd.f32 %v2095_v51, %v999_v3 }
 0x172   : > { %v1062_v63 = vmax.f32 %v1030_v52, 0.0  ;;  %v1063_v0 = vmax.f32 %v1031_v53, 0.0  ;;  %v1000_v4 = vld [vmem:[#allocation2 + $0x88] sm:$0xff]  ;;  %v1064_v6 = vmax.f32 %v1032_v57, 0.0  ;;  %v1065_v7 = vmax.f32 %v1033_v58, 0.0  ;;  %v1004_v16 = vld [vmem:[#allocation2 + $0xf0] sm:$0xff] }
 0x173   : > { %v1001_v5 = vld [vmem:[#allocation2 + $0xe8] sm:$0xff]  ;;  %v1066_v8 = vmax.f32 %v1034_v60, 0.0  ;;  %v1037_v9 = vadd.f32 %v2095_v51, %v998_v62  ;;  %v1067_v13 = vmax.f32 %v1035_v1, 0.0  ;;  %v1068_v14 = vmax.f32 %v1036_v2, 0.0  ;;  %v1007_v27 = vld [vmem:[#allocation2 + $0x38] sm:$0xff]  ;;  %v1009_v33 = vld [vmem:[#allocation2 + $0x40] sm:$0xff] }
 0x174   : > { %v1479_v12 = vpack.c.bf16 %v1063_v0, %v1062_v63  ;;  %v1484_v17 = vpack.c.bf16 %v1065_v7, %v1064_v6  ;;  %v1039_v19 = vadd.f32 %v2095_v51, %v1000_v4  ;;  %v1040_v20 = vadd.f32 %v2095_v51, %v1001_v5  ;;  %v1005_v21 = vld [vmem:[#allocation2 + $0x8] sm:$0xff]  ;;  %v1006_v22 = vld [vmem:[#allocation2 + $0x78] sm:$0xff]  ;;  %v1011_v43 = vld [vmem:[#allocation2 + $0xe0] sm:$0xff] }
 0x175   : > { %v1069_v18 = vmax.f32 %v1037_v9, 0.0  ;;  %v1489_v23 = vpack.c.bf16 %v1067_v13, %v1066_v8  ;;  %v1070_v24 = vmax.f32 %v1038_v15, 0.0  ;;  %v1041_v25 = vadd.f32 %v2095_v51, %v1002_v10  ;;  %v1008_v28 = vld [vmem:[#allocation2 + $0x58] sm:$0xff]  ;;  %v1010_v38 = vld [vmem:[#allocation2 + $0xc8] sm:$0xff]  ;;  %v1012_v44 = vld [vmem:[#allocation2 + $0x90] sm:$0xff] }
 0x176   : > { %1480 = vst [vmem:[%s2038_s30] sm:$0xff] %v1479_v12   ;;  %v1042_v26 = vadd.f32 %v2095_v51, %v1003_v11  ;;  %1556 = vst [vmem:[%s2038_s30 + $0x8] sm:$0xff] %v1484_v17   ;;  %v1071_v30 = vmax.f32 %v1039_v19, 0.0  ;;  %v1072_v31 = vmax.f32 %v1040_v20, 0.0  ;;  %v1043_v32 = vadd.f32 %v2095_v51, %v1004_v16  ;;  %v1013_v49 = vld [vmem:[#allocation2 + $0x70] sm:$0xff]  ;;  %v1014_v50 = vld [vmem:[#allocation2 + $0xc0] sm:$0xff] }
 0x177   : > { %v1494_v29 = vpack.c.bf16 %v1069_v18, %v1068_v14  ;;  %1557 = vst [vmem:[%s2038_s30 + $0x10] sm:$0xff] %v1489_v23   ;;  %v1073_v34 = vmax.f32 %v1041_v25, 0.0  ;;  %v1044_v36 = vadd.f32 %v2095_v51, %v1005_v21  ;;  %v1045_v37 = vadd.f32 %v2095_v51, %v1006_v22  ;;  %v1015_v56 = vld [vmem:[#allocation2 + $0xa8] sm:$0xff]  ;;  %v1016_v57 = vld [vmem:[#allocation2 + $0xd0] sm:$0xff]  ;;  %v1019_v8 = vld [vmem:[#allocation2 + $0xa0] sm:$0xff] }
 0x178   : > { %v1074_v35 = vmax.f32 %v1042_v26, 0.0  ;;  %v1499_v39 = vpack.c.bf16 %v1071_v30, %v1070_v24  ;;  %v1075_v40 = vmax.f32 %v1043_v32, 0.0  ;;  %v1046_v41 = vadd.f32 %v2095_v51, %v1007_v27  ;;  %v1017_v62 = vld [vmem:[#allocation2 + $0x10] sm:$0xff]  ;;  %v1018_v3 = vld [vmem:[#allocation2 + $0x28] sm:$0xff]  ;;  %v1020_v9 = vld [vmem:[#allocation2 + $0xf8] sm:$0xff] }
 0x179   : > { %1558 = vst [vmem:[%s2038_s30 + $0x18] sm:$0xff] %v1494_v29   ;;  %v1047_v42 = vadd.f32 %v2095_v51, %v1008_v28  ;;  %v1504_v45 = vpack.c.bf16 %v1073_v34, %v1072_v31  ;;  %v1076_v46 = vmax.f32 %v1044_v36, 0.0  ;;  %v1077_v47 = vmax.f32 %v1045_v37, 0.0  ;;  %v1021_v14 = vld [vmem:[#allocation2 + $0x20] sm:$0xff]  ;;  %v1022_v15 = vld [vmem:[#allocation2 + $0x98] sm:$0xff] }
 0x17a   : > { %v1048_v48 = vadd.f32 %v2095_v51, %v1009_v33  ;;  %1559 = vst [vmem:[%s2038_s30 + $0x20] sm:$0xff] %v1499_v39   ;;  %v1509_v52 = vpack.c.bf16 %v1075_v40, %v1074_v35  ;;  %v1078_v53 = vmax.f32 %v1046_v41, 0.0  ;;  %v1049_v55 = vadd.f32 %v2095_v51, %v1010_v38 }
 0x17b   : > { %v1079_v54 = vmax.f32 %v1047_v42, 0.0  ;;  %1560 = vst [vmem:[%s2038_s30 + $0x28] sm:$0xff] %v1504_v45   ;;  %v1514_v58 = vpack.c.bf16 %v1077_v47, %v1076_v46  ;;  %v1050_v60 = vadd.f32 %v2095_v51, %v1011_v43  ;;  %v1051_v61 = vadd.f32 %v2095_v51, %v1012_v44 }
 0x17c   : > { %v1080_v59 = vmax.f32 %v1048_v48, 0.0  ;;  %1561 = vst [vmem:[%s2038_s30 + $0x30] sm:$0xff] %v1509_v52   ;;  %v1081_v0 = vmax.f32 %v1049_v55, 0.0  ;;  %v1052_v1 = vadd.f32 %v2095_v51, %v1013_v49  ;;  %v1053_v2 = vadd.f32 %v2095_v51, %v1014_v50 }
 0x17d   : > { %v1519_v63 = vpack.c.bf16 %v1079_v54, %v1078_v53  ;;  %1562 = vst [vmem:[%s2038_s30 + $0x38] sm:$0xff] %v1514_v58   ;;  %v1082_v4 = vmax.f32 %v1050_v60, 0.0  ;;  %v1083_v5 = vmax.f32 %v1051_v61, 0.0  ;;  %v1054_v6 = vadd.f32 %v2095_v51, %v1015_v56 }
 0x17e   : > { %v1055_v7 = vadd.f32 %v2095_v51, %v1016_v57  ;;  %v1524_v10 = vpack.c.bf16 %v1081_v0, %v1080_v59  ;;  %v1084_v11 = vmax.f32 %v1052_v1, 0.0  ;;  %v1085_v12 = vmax.f32 %v1053_v2, 0.0 }
 0x17f   : > { %1563 = vst [vmem:[%s2038_s30 + $0x40] sm:$0xff] %v1519_v63   ;;  %v1056_v13 = vadd.f32 %v2095_v51, %v1017_v62  ;;  %v1529_v16 = vpack.c.bf16 %v1083_v5, %v1082_v4  ;;  %v1086_v17 = vmax.f32 %v1054_v6, 0.0  ;;  %v1057_v19 = vadd.f32 %v2095_v51, %v1018_v3 }
 0x180   : > { %v1087_v18 = vmax.f32 %v1055_v7, 0.0  ;;  %1564 = vst [vmem:[%s2038_s30 + $0x48] sm:$0xff] %v1524_v10   ;;  %v1534_v20 = vpack.c.bf16 %v1085_v12, %v1084_v11  ;;  %v1058_v22 = vadd.f32 %v2095_v51, %v1019_v8  ;;  %v1059_v23 = vadd.f32 %v2095_v51, %v1020_v9 }
 0x181   : > { %v1088_v21 = vmax.f32 %v1056_v13, 0.0  ;;  %1565 = vst [vmem:[%s2038_s30 + $0x50] sm:$0xff] %v1529_v16   ;;  %v1089_v25 = vmax.f32 %v1057_v19, 0.0  ;;  %v1060_v26 = vadd.f32 %v2095_v51, %v1021_v14  ;;  %v1061_v27 = vadd.f32 %v2095_v51, %v1022_v15 }
 0x182   : > { %v1539_v24 = vpack.c.bf16 %v1087_v18, %v1086_v17  ;;  %1566 = vst [vmem:[%s2038_s30 + $0x58] sm:$0xff] %v1534_v20   ;;  %v1090_v28 = vmax.f32 %v1058_v22, 0.0  ;;  %v1091_v29 = vmax.f32 %v1059_v23, 0.0 }
 0x183   : > { %v1544_v30 = vpack.c.bf16 %v1089_v25, %v1088_v21  ;;  %v1092_v31 = vmax.f32 %v1060_v26, 0.0  ;;  %v1093_v32 = vmax.f32 %v1061_v27, 0.0 }
 0x184   : > { %1567 = vst [vmem:[%s2038_s30 + $0x60] sm:$0xff] %v1539_v24   ;;  %v1549_v33 = vpack.c.bf16 %v1091_v29, %v1090_v28 }
 0x185   : > { %1568 = vst [vmem:[%s2038_s30 + $0x68] sm:$0xff] %v1544_v30   ;;  %v1554_v34 = vpack.c.bf16 %v1093_v32, %v1092_v31 }
 0x186   : > { %1569 = vst [vmem:[%s2038_s30 + $0x70] sm:$0xff] %v1549_v33  }
 0x187   : > { %1570 = vst [vmem:[%s2038_s30 + $0x78] sm:$0xff] %v1554_v34  }
 0x188 PF: > { %s13_s18 = sadd.s32 1, %s1874_s18   ;;  %s2170_s12 = smov %s1854_s13 }
 0x189   : > { %p10_p0 = scmp.ge.s32.totalorder %s13_s18, 6   ;;  %s2171_s13 = smov %s1948_s25 }
 0x18a   : > { %s2172_s14 = smov %s1866_s16  ;;  %s2173_s15 = smov %s1870_s17 }
 0x18b   : > { %s2174_s16 = smov %s2177_s19  ;;  %s2175_s17 = smov %s2181_s20 }
 0x18c   :  { %12 = sbr.rel (!%p10_p0) target bundleno = 4 (0x4), region = 116 }

// kernel: species_gcn_forward.4
= control target key start
LH: loop header
LB: loop body
LE: loop exit
PB: predicated region body
PF: predicated region fallthrough
CT: control target
= control target key end

     0   :  { %s1054_s9 = smov 0   ;;  %s1138_s0 = inlined_call_operand.vmem [shape: bf16[512,128], index: 0, kind: input, shape index: {}]   ;;  %s1139_s1 = inlined_call_operand.vmem [shape: bf16[128,128], index: 1, kind: input, shape index: {}]   ;;  %s1140_s2 = inlined_call_operand.vmem [shape: bf16[512,128], index: 2, kind: output, shape index: {}]  }
   0x1 LB: > { %s717_s10 = sadd.s32 4294967295, %s1037_s9   ;;  %p721_p0 = scmp.ge.s32.totalorder %s1037_s9, 1  ;;  %s1037_s9 = sphi %s1054_s9, %s12_s9  }
   0x2   : > { %p113_p1 = scmp.lt.s32.totalorder %s1037_s9, 3 }
   0x4   : > { %p114_p2 = pnand %p721_p0, %p113_p1 }
   0x5   : > { %s722_s13 = sshll.u32 (!%p114_p2), %s717_s10, 5 }
   0x6   : > { %117 = sbr.rel (%p114_p2) target bundleno = 270 (0x10e), region = 28  ;;  %p136_p3 = scmp.lt.s32.totalorder (!%p114_p2), %s722_s13, 63 }
   0xb   : > { %v1007_v0 = vld [vmem:[%s1139_s1 + $0x38] sm:$0xff]   ;;  %v1008_v1 = vld [vmem:[%s1139_s1 + $0x30] sm:$0xff]   ;;  %s1142_s13 = smov (!%p136_p3, %s722_s13), 63  ;;  %v1009_v2 = vld [vmem:[%s1139_s1 + $0x28] sm:$0xff]  }
   0xc   : > { %935 = vmatprep.subr.bf16.mxu0 %v1007_v0  ;;  %983 = vmatprep.subr.bf16.mxu1 %v1007_v0  ;;  %s723_s18 = sshll.u32 %s1142_s13, 2  ;;  %v1010_v3 = vld [vmem:[%s1139_s1 + $0x20] sm:$0xff]   ;;  %v1011_v6 = vld [vmem:[%s1139_s1 + $0x18] sm:$0xff]   ;;  %v1012_v7 = vld [vmem:[%s1139_s1 + $0x10] sm:$0xff]  }
   0xd   : > { %936 = vmatpush3.bf16.msra.mxu0 %v1007_v0  ;;  %991 = vmatpush3.bf16.msra.mxu1 %v1007_v0  ;;  %s1079_s21 = scalar_lea.vmem %s1138_s0, %s723_s18  ;;  %v1013_v8 = vld [vmem:[%s1139_s1 + $0x8] sm:$0xff]   ;;  %v1014_v9 = vld [vmem:[%s1139_s1] sm:$0xff]   ;;  %s1117_s6 = scalar_lea.vmem %s1140_s2, %s723_s18 }
   0xe   : > { %937 = vmatprep.subr.bf16.mxu0 %v1008_v1  ;;  %984 = vmatprep.subr.bf16.mxu1 %v1008_v1  ;;  %v1015_v4 = vld [vmem:[%s1079_s21] sm:$0xff]   ;;  %v1017_v10 = vld [vmem:[%s1079_s21 + $0x8] sm:$0xff]   ;;  %v1019_v12 = vld [vmem:[%s1079_s21 + $0x10] sm:$0xff]  }
   0xf   : > { %v1016_v5 = vld [vmem:[%s1079_s21 + $0x40] sm:$0xff]   ;;  %951 = vmatprep.mubr.bf16.mxu0 %v1015_v4  ;;  %v1018_v11 = vld [vmem:[%s1079_s21 + $0x48] sm:$0xff]   ;;  %v1020_v13 = vld [vmem:[%s1079_s21 + $0x50] sm:$0xff]  }
  0x10   : > { %967 = vmatprep.mubr.bf16.mxu1 %v1016_v5  ;;  %v1021_v14 = vld [vmem:[%s1079_s21 + $0x18] sm:$0xff]   ;;  %v1023_v16 = vld [vmem:[%s1079_s21 + $0x20] sm:$0xff]   ;;  %v1025_v18 = vld [vmem:[%s1079_s21 + $0x28] sm:$0xff]  }
  0x11   : > { %938 = vmatpush3.bf16.msra.mxu0 %v1008_v1  ;;  %992 = vmatpush3.bf16.msra.mxu1 %v1008_v1  ;;  %v1022_v15 = vld [vmem:[%s1079_s21 + $0x58] sm:$0xff]   ;;  %v1024_v17 = vld [vmem:[%s1079_s21 + $0x60] sm:$0xff]   ;;  %v1026_v19 = vld [vmem:[%s1079_s21 + $0x68] sm:$0xff]  }
  0x12   : > { %939 = vmatprep.subr.bf16.mxu0 %v1009_v2  ;;  %985 = vmatprep.subr.bf16.mxu1 %v1009_v2  ;;  %v1027_v20 = vld [vmem:[%s1079_s21 + $0x30] sm:$0xff]   ;;  %v1029_v22 = vld [vmem:[%s1079_s21 + $0x38] sm:$0xff]  }
  0x13   : > { %v1028_v21 = vld [vmem:[%s1079_s21 + $0x70] sm:$0xff]   ;;  %v1030_v23 = vld [vmem:[%s1079_s21 + $0x78] sm:$0xff]  }
  0x15   : > { %940 = vmatpush3.bf16.msra.mxu0 %v1009_v2  ;;  %993 = vmatpush3.bf16.msra.mxu1 %v1009_v2 }
  0x16   : > { %941 = vmatprep.subr.bf16.mxu0 %v1010_v3  ;;  %986 = vmatprep.subr.bf16.mxu1 %v1010_v3 }
  0x19   : > { %942 = vmatpush3.bf16.msra.mxu0 %v1010_v3  ;;  %994 = vmatpush3.bf16.msra.mxu1 %v1010_v3 }
  0x1a   : > { %943 = vmatprep.subr.bf16.mxu0 %v1011_v6  ;;  %987 = vmatprep.subr.bf16.mxu1 %v1011_v6 }
  0x1d   : > { %944 = vmatpush3.bf16.msra.mxu0 %v1011_v6  ;;  %995 = vmatpush3.bf16.msra.mxu1 %v1011_v6 }
  0x1e   : > { %945 = vmatprep.subr.bf16.mxu0 %v1012_v7  ;;  %988 = vmatprep.subr.bf16.mxu1 %v1012_v7 }
  0x21   : > { %946 = vmatpush3.bf16.msra.mxu0 %v1012_v7  ;;  %996 = vmatpush3.bf16.msra.mxu1 %v1012_v7 }
  0x22   : > { %947 = vmatprep.subr.bf16.mxu0 %v1013_v8  ;;  %989 = vmatprep.subr.bf16.mxu1 %v1013_v8 }
  0x25   : > { %948 = vmatpush3.bf16.msra.mxu0 %v1013_v8  ;;  %997 = vmatpush3.bf16.msra.mxu1 %v1013_v8 }
  0x26   : > { %949 = vmatprep.subr.bf16.mxu0 %v1014_v9  ;;  %990 = vmatprep.subr.bf16.mxu1 %v1014_v9 }
  0x29   : > { %950 = vmatpush3.bf16.msra.mxu0 %v1014_v9  ;;  %998 = vmatpush3.bf16.msra.mxu1 %v1014_v9 }
  0x2c   : > { %952 = vmatmul.mubr.bf16.vlgmr.msra.gmra.mxu0 %v1017_v10  ;;  %968 = vmatmul.mubr.bf16.vlgmr.msra.gmra.mxu1 %v1018_v11 }
  0x2d   : > { %955 = vmatprep.mubr.bf16.mxu0 %v1019_v12  ;;  %971 = vmatprep.mubr.bf16.mxu1 %v1020_v13 }
  0x34   : > { %956 = vmatmul.mubr.bf16.gmra.mxu0 %v1021_v14  ;;  %972 = vmatmul.mubr.bf16.gmra.mxu1 %v1022_v15 }
  0x35   : > { %959 = vmatprep.mubr.bf16.mxu0 %v1023_v16  ;;  %975 = vmatprep.mubr.bf16.mxu1 %v1024_v17 }
  0x3c   : > { %960 = vmatmul.mubr.bf16.gmra.mxu0 %v1025_v18  ;;  %976 = vmatmul.mubr.bf16.gmra.mxu1 %v1026_v19 }
  0x3d   : > { %963 = vmatprep.mubr.bf16.mxu0 %v1027_v20  ;;  %979 = vmatprep.mubr.bf16.mxu1 %v1028_v21 }
  0x44   : > { %964 = vmatmul.mubr.bf16.gmra.mxu0 %v1029_v22  ;;  %980 = vmatmul.mubr.bf16.gmra.mxu1 %v1030_v23 }
  0xec   : > { %v953_v24 = vpop.f32.mrf.mxu0  ;;  %v969_v25 = vpop.f32.mrf.mxu1 }
  0xee   : > { %v374_v26 = vpop.f32.mrf.mxu0  ;;  %v438_v27 = vpop.f32.mrf.mxu1 }
  0xf0   : > { %v954_v28 = vpop.f32.mrf.mxu0  ;;  %v970_v29 = vpop.f32.mrf.mxu1 }
  0xf1   : > { %v824_v30 = vpack.c.bf16 %v954_v28, %v953_v24  ;;  %v864_v31 = vpack.c.bf16 %v970_v29, %v969_v25 }
  0xf2   : > { %v377_v32 = vpop.f32.mrf.mxu0  ;;  %v441_v33 = vpop.f32.mrf.mxu1 }
  0xf3   : > { %896 = vst [vmem:[%s1117_s6 + $0x8] sm:$0xff] %v824_v30   ;;  %904 = vst [vmem:[%s1117_s6 + $0x48] sm:$0xff] %v864_v31   ;;  %v819_v34 = vpack.c.bf16 %v377_v32, %v374_v26  ;;  %v859_v35 = vpack.c.bf16 %v441_v33, %v438_v27 }
  0xf4   : > { %v957_v36 = vpop.f32.mrf.mxu0  ;;  %v973_v37 = vpop.f32.mrf.mxu1 }
  0xf5   : > { %820 = vst [vmem:[%s1117_s6] sm:$0xff] %v819_v34   ;;  %903 = vst [vmem:[%s1117_s6 + $0x40] sm:$0xff] %v859_v35  }
  0xf6   : > { %v390_v38 = vpop.f32.mrf.mxu0  ;;  %v454_v39 = vpop.f32.mrf.mxu1 }
  0xf8   : > { %v958_v40 = vpop.f32.mrf.mxu0  ;;  %v974_v41 = vpop.f32.mrf.mxu1 }
  0xf9   : > { %v834_v42 = vpack.c.bf16 %v958_v40, %v957_v36  ;;  %v874_v43 = vpack.c.bf16 %v974_v41, %v973_v37 }
  0xfa   : > { %v393_v44 = vpop.f32.mrf.mxu0  ;;  %v457_v45 = vpop.f32.mrf.mxu1 }
  0xfb   : > { %898 = vst [vmem:[%s1117_s6 + $0x18] sm:$0xff] %v834_v42   ;;  %906 = vst [vmem:[%s1117_s6 + $0x58] sm:$0xff] %v874_v43   ;;  %v829_v46 = vpack.c.bf16 %v393_v44, %v390_v38  ;;  %v869_v47 = vpack.c.bf16 %v457_v45, %v454_v39 }
  0xfc   : > { %v961_v48 = vpop.f32.mrf.mxu0  ;;  %v977_v49 = vpop.f32.mrf.mxu1 }
  0xfd   : > { %897 = vst [vmem:[%s1117_s6 + $0x10] sm:$0xff] %v829_v46   ;;  %905 = vst [vmem:[%s1117_s6 + $0x50] sm:$0xff] %v869_v47  }
  0xfe   : > { %v406_v50 = vpop.f32.mrf.mxu0  ;;  %v470_v51 = vpop.f32.mrf.mxu1 }
 0x100   : > { %v962_v52 = vpop.f32.mrf.mxu0  ;;  %v978_v53 = vpop.f32.mrf.mxu1 }
 0x101   : > { %v844_v54 = vpack.c.bf16 %v962_v52, %v961_v48  ;;  %v884_v55 = vpack.c.bf16 %v978_v53, %v977_v49 }
 0x102   : > { %v409_v56 = vpop.f32.mrf.mxu0  ;;  %v473_v57 = vpop.f32.mrf.mxu1 }
 0x103   : > { %900 = vst [vmem:[%s1117_s6 + $0x28] sm:$0xff] %v844_v54   ;;  %908 = vst [vmem:[%s1117_s6 + $0x68] sm:$0xff] %v884_v55   ;;  %v839_v58 = vpack.c.bf16 %v409_v56, %v406_v50  ;;  %v879_v59 = vpack.c.bf16 %v473_v57, %v470_v51 }
 0x104   : > { %v965_v60 = vpop.f32.mrf.mxu0  ;;  %v981_v61 = vpop.f32.mrf.mxu1 }
 0x105   : > { %899 = vst [vmem:[%s1117_s6 + $0x20] sm:$0xff] %v839_v58   ;;  %907 = vst [vmem:[%s1117_s6 + $0x60] sm:$0xff] %v879_v59  }
 0x106   : > { %v422_v62 = vpop.f32.mrf.mxu0  ;;  %v486_v63 = vpop.f32.mrf.mxu1 }
 0x108   : > { %v966_v0 = vpop.f32.mrf.mxu0  ;;  %v982_v1 = vpop.f32.mrf.mxu1 }
 0x109   : > { %v854_v2 = vpack.c.bf16 %v966_v0, %v965_v60  ;;  %v894_v3 = vpack.c.bf16 %v982_v1, %v981_v61 }
 0x10a   : > { %v425_v4 = vpop.f32.mrf.mxu0  ;;  %v489_v5 = vpop.f32.mrf.mxu1 }
 0x10b   : > { %902 = vst [vmem:[%s1117_s6 + $0x38] sm:$0xff] %v854_v2   ;;  %910 = vst [vmem:[%s1117_s6 + $0x78] sm:$0xff] %v894_v3   ;;  %v849_v6 = vpack.c.bf16 %v425_v4, %v422_v62  ;;  %v889_v7 = vpack.c.bf16 %v489_v5, %v486_v63 }
 0x10d   : > { %901 = vst [vmem:[%s1117_s6 + $0x30] sm:$0xff] %v849_v6   ;;  %909 = vst [vmem:[%s1117_s6 + $0x70] sm:$0xff] %v889_v7  }
 0x10e PF: > { %s12_s9 = sadd.s32 1, %s1037_s9  }
 0x10f   : > { %p9_p4 = scmp.ge.s32.totalorder %s12_s9, 4  }
 0x111   :  { %11 = sbr.rel (!%p9_p4) target bundleno = 1 (0x1), region = 58 }

// kernel: species_gcn_forward.7
= control target key start
LH: loop header
LB: loop body
LE: loop exit
PB: predicated region body
PF: predicated region fallthrough
CT: control target
= control target key end

     0   :  { %s1930_s12 = smov 0   ;;  %s1932_s13 = smov 0   ;;  %s2215_s0 = inlined_call_operand.vmem [shape: bf16[512,512], index: 0, kind: input, shape index: {}]   ;;  %s2216_s1 = inlined_call_operand.vmem [shape: bf16[512,128], index: 1, kind: input, shape index: {}]   ;;  %s2217_s2 = inlined_call_operand.vmem [shape: f32[1,128], index: 2, kind: input, shape index: {}]   ;;  %s2218_s3 = inlined_call_operand.vmem [shape: f32[512,128], index: 3, kind: output, shape index: {}]  }
   0x1   :  { %s1934_s14 = smov 0   ;;  %s1936_s15 = smov 0  }
   0x2   :  { %s1938_s16 = smov 0   ;;  %s1940_s17 = smov 0  }
   0x3   :  { %s1942_s18 = smov 0  }
   0x4 LB: > { %s22_s19 = sadd.s32 1, %s1899_s16  ;;  %s25_s20 = sadd.s32 1, %s1903_s17  ;;  %s1907_s18 = sphi %s1942_s18, %s13_s18   ;;  %s1903_s17 = sphi %s1940_s17, %s2224_s17   ;;  %s1899_s16 = sphi %s1938_s16, %s2223_s16   ;;  %s1895_s15 = sphi %s1936_s15, %s2222_s15   ;;  %s1891_s14 = sphi %s1934_s14, %s2221_s14   ;;  %s1887_s13 = sphi %s1932_s13, %s2220_s13   ;;  %s1883_s12 = sphi %s1930_s12, %s2219_s12  }
   0x5   : > { %p23_p0 = scmp.ge.s32.totalorder %s22_s19, 2  ;;  %p41_p1 = scmp.ne.s32.totalorder %s1887_s13, %s1883_s12 }
   0x6   : > { %p42_p2 = scmp.eq.s32.totalorder %s1907_s18, 0  ;;  %s34_s24 = sadd.s32 1, %s1887_s13 }
   0x7   : > { %s2226_s19 = smov (%p23_p0, %s22_s19), 0  ;;  %s2228_s20 = smov (!%p23_p0, %s25_s20), %s1903_s17 }
   0x8   : > { %p43_p3 = por %p42_p2, %p41_p1  ;;  %p27_p4 = scmp.ge.s32.totalorder %s2228_s20, 2 }
   0x9   : > { %s30_s21 = ssub.s32 %s1899_s16, %s2226_s19  ;;  %p1378_p6 = scmp.ge.s32.totalorder %s1907_s18, 4 }
   0xa   : > { %s2230_s20 = smov (%p27_p4, %s2228_s20), 0 }
   0xb   : > { %s29_s22 = ssub.s32 %s1903_s17, %s2230_s20  ;;  %143 = sbr.rel (%p1378_p6) target bundleno = 39 (0x27), region = 20 }
   0xc   : > { %s31_s23 = sor.u32 %s30_s21, %s29_s22 }
   0xd   : > { %p32_p5 = scmp.eq.s32.totalorder %s31_s23, 0 }
   0xf   : > { %s1981_s25 = scalar_select %p32_p5, %s1887_s13, %s34_s24  }
  0x10   : > { %146 = sbr.rel (!%p43_p3) target bundleno = 39 (0x27), region = 24  ;;  %s148_s26 = sand.u32 (%p43_p3), 1, %s1887_s13  }
  0x11   : > { %s1381_s27 = sshll.u32 (%p43_p3), %s1899_s16, 1  ;;  %s1379_s28 = sshll.u32 (%p43_p3), %s148_s26, 8 }
  0x12   : > { %s1475_s29 = sshll.u32 (%p43_p3), %s1903_s17, 7  ;;  %s1995_s8 = scalar_lea.vmem (%p43_p3), [#allocation3], %s1379_s28 }
  0x13   : > { %s154_s30 = sadd.s32 (%p43_p3), %s1475_s29, %s1381_s27 }
  0x14   : > { %s1383_s4 = sshll.u32 (%p43_p3), %s154_s30, 2 }
  0x15   : > { %s1990_s7 = scalar_lea.vmem %s2215_s0, %s1383_s4 }
  0x16   : > { %v247_v0 = vld [vmem:[%s1990_s7] sm:$0xff]  ;;  %v249_v1 = vld [vmem:[%s1990_s7 + $0x10] sm:$0xff] }
  0x17   : > { %v251_v2 = vld [vmem:[%s1990_s7 + $0x20] sm:$0xff]  ;;  %248 = vst [vmem:[%s1995_s8] sm:$0xff] %v247_v0  ;;  %250 = vst [vmem:[%s1995_s8 + $0x8] sm:$0xff] %v249_v1  ;;  %v253_v3 = vld [vmem:[%s1990_s7 + $0x30] sm:$0xff] }
  0x18   : > { %252 = vst [vmem:[%s1995_s8 + $0x10] sm:$0xff] %v251_v2  ;;  %v255_v4 = vld [vmem:[%s1990_s7 + $0x40] sm:$0xff]  ;;  %v257_v5 = vld [vmem:[%s1990_s7 + $0x50] sm:$0xff]  ;;  %254 = vst [vmem:[%s1995_s8 + $0x18] sm:$0xff] %v253_v3 }
  0x19   : > { %256 = vst [vmem:[%s1995_s8 + $0x20] sm:$0xff] %v255_v4  ;;  %258 = vst [vmem:[%s1995_s8 + $0x28] sm:$0xff] %v257_v5  ;;  %v259_v6 = vld [vmem:[%s1990_s7 + $0x60] sm:$0xff]  ;;  %v261_v7 = vld [vmem:[%s1990_s7 + $0x70] sm:$0xff] }
  0x1a   : > { %v263_v8 = vld [vmem:[%s1990_s7 + $0x80] sm:$0xff]  ;;  %260 = vst [vmem:[%s1995_s8 + $0x30] sm:$0xff] %v259_v6  ;;  %262 = vst [vmem:[%s1995_s8 + $0x38] sm:$0xff] %v261_v7  ;;  %v265_v9 = vld [vmem:[%s1990_s7 + $0x90] sm:$0xff] }
  0x1b   : > { %264 = vst [vmem:[%s1995_s8 + $0x40] sm:$0xff] %v263_v8  ;;  %v267_v10 = vld [vmem:[%s1990_s7 + $0xa0] sm:$0xff]  ;;  %v269_v11 = vld [vmem:[%s1990_s7 + $0xb0] sm:$0xff]  ;;  %266 = vst [vmem:[%s1995_s8 + $0x48] sm:$0xff] %v265_v9 }
  0x1c   : > { %268 = vst [vmem:[%s1995_s8 + $0x50] sm:$0xff] %v267_v10  ;;  %270 = vst [vmem:[%s1995_s8 + $0x58] sm:$0xff] %v269_v11  ;;  %v271_v12 = vld [vmem:[%s1990_s7 + $0xc0] sm:$0xff]  ;;  %v273_v13 = vld [vmem:[%s1990_s7 + $0xd0] sm:$0xff] }
  0x1d   : > { %v275_v14 = vld [vmem:[%s1990_s7 + $0xe0] sm:$0xff]  ;;  %272 = vst [vmem:[%s1995_s8 + $0x60] sm:$0xff] %v271_v12  ;;  %274 = vst [vmem:[%s1995_s8 + $0x68] sm:$0xff] %v273_v13  ;;  %v277_v15 = vld [vmem:[%s1990_s7 + $0xf0] sm:$0xff] }
  0x1e   : > { %276 = vst [vmem:[%s1995_s8 + $0x70] sm:$0xff] %v275_v14  ;;  %v279_v16 = vld [vmem:[%s1990_s7 + $0x100] sm:$0xff]  ;;  %v281_v17 = vld [vmem:[%s1990_s7 + $0x110] sm:$0xff]  ;;  %278 = vst [vmem:[%s1995_s8 + $0x78] sm:$0xff] %v277_v15 }
  0x1f   : > { %280 = vst [vmem:[%s1995_s8 + $0x80] sm:$0xff] %v279_v16  ;;  %282 = vst [vmem:[%s1995_s8 + $0x88] sm:$0xff] %v281_v17  ;;  %v283_v18 = vld [vmem:[%s1990_s7 + $0x120] sm:$0xff]  ;;  %v285_v19 = vld [vmem:[%s1990_s7 + $0x130] sm:$0xff] }
  0x20   : > { %v287_v20 = vld [vmem:[%s1990_s7 + $0x140] sm:$0xff]  ;;  %284 = vst [vmem:[%s1995_s8 + $0x90] sm:$0xff] %v283_v18  ;;  %286 = vst [vmem:[%s1995_s8 + $0x98] sm:$0xff] %v285_v19  ;;  %v289_v21 = vld [vmem:[%s1990_s7 + $0x150] sm:$0xff] }
  0x21   : > { %288 = vst [vmem:[%s1995_s8 + $0xa0] sm:$0xff] %v287_v20  ;;  %v291_v22 = vld [vmem:[%s1990_s7 + $0x160] sm:$0xff]  ;;  %v293_v23 = vld [vmem:[%s1990_s7 + $0x170] sm:$0xff]  ;;  %290 = vst [vmem:[%s1995_s8 + $0xa8] sm:$0xff] %v289_v21 }
  0x22   : > { %292 = vst [vmem:[%s1995_s8 + $0xb0] sm:$0xff] %v291_v22  ;;  %294 = vst [vmem:[%s1995_s8 + $0xb8] sm:$0xff] %v293_v23  ;;  %v295_v24 = vld [vmem:[%s1990_s7 + $0x180] sm:$0xff]  ;;  %v297_v25 = vld [vmem:[%s1990_s7 + $0x190] sm:$0xff] }
  0x23   : > { %v299_v26 = vld [vmem:[%s1990_s7 + $0x1a0] sm:$0xff]  ;;  %296 = vst [vmem:[%s1995_s8 + $0xc0] sm:$0xff] %v295_v24  ;;  %298 = vst [vmem:[%s1995_s8 + $0xc8] sm:$0xff] %v297_v25  ;;  %v301_v27 = vld [vmem:[%s1990_s7 + $0x1b0] sm:$0xff] }
  0x24   : > { %300 = vst [vmem:[%s1995_s8 + $0xd0] sm:$0xff] %v299_v26  ;;  %v303_v28 = vld [vmem:[%s1990_s7 + $0x1c0] sm:$0xff]  ;;  %v305_v29 = vld [vmem:[%s1990_s7 + $0x1d0] sm:$0xff]  ;;  %302 = vst [vmem:[%s1995_s8 + $0xd8] sm:$0xff] %v301_v27 }
  0x25   : > { %304 = vst [vmem:[%s1995_s8 + $0xe0] sm:$0xff] %v303_v28  ;;  %306 = vst [vmem:[%s1995_s8 + $0xe8] sm:$0xff] %v305_v29  ;;  %v307_v30 = vld [vmem:[%s1990_s7 + $0x1e0] sm:$0xff]  ;;  %v309_v31 = vld [vmem:[%s1990_s7 + $0x1f0] sm:$0xff] }
  0x26   : > { %308 = vst [vmem:[%s1995_s8 + $0xf0] sm:$0xff] %v307_v30  ;;  %310 = vst [vmem:[%s1995_s8 + $0xf8] sm:$0xff] %v309_v31 }
  0x27 PF: > { %p1384_p7 = scmp.ge.s32.totalorder %s1907_s18, 1  ;;  %p324_p8 = scmp.lt.s32.totalorder %s1907_s18, 5 }
  0x29   : > { %p325_p9 = pnand %p1384_p7, %p324_p8 }
  0x2a   : > { %s331_s9 = sand.u32 (!%p325_p9), 1, %s1883_s12   ;;  %s1386_s10 = sshll.u32 (!%p325_p9), %s1891_s14, 5 }
  0x2b   : > { %328 = sbr.rel (%p325_p9) target bundleno = 449 (0x1c1), region = 66  ;;  %s1385_s11 = sshll.u32 (!%p325_p9), %s331_s9, 8 }
  0x2c   : > { %p362_p10 = scmp.lt.s32.totalorder (!%p325_p9), %s1386_s10, 63  ;;  %s1388_s21 = sshll.u32 (!%p325_p9), %s1895_s15, 5 }
  0x2d   : > { %p368_p11 = scmp.lt.s32.totalorder (!%p325_p9), %s1388_s21, 63  ;;  %s2073_s12 = scalar_lea.vmem (!%p325_p9), [#allocation3], %s1385_s11 }
  0x2e   : > { %p1390_p12 = scmp.ne.s32.totalorder (!%p325_p9), %s1891_s14, 0 }
  0x30   : > { %s2232_s10 = smov (!%p362_p10, %s1386_s10), 63  ;;  %s2234_s21 = smov (!%p368_p11, %s1388_s21), 63 }
  0x31   : > { %s1387_s22 = sshll.u32 %s2232_s10, 2  ;;  %s1389_s27 = sshll.u32 %s2234_s21, 3 }
  0x32   : > { %s2066_s26 = scalar_lea.vmem %s2216_s1, %s1387_s22  ;;  %s2071_s30 = scalar_lea.vmem %s2218_s3, %s1389_s27 }
  0x33   : > { %377 = sbr.rel (%p1390_p12) target bundleno = 73 (0x49), region = 74 }
  0x38   : > { %v1909_v32 = vmov 0.0  }
  0x39   : > { %378 = vst [vmem:[#allocation2 + $0xb0] sm:$0xff] %v1909_v32  ;;  %379 = vst [vmem:[#allocation2] sm:$0xff] %v1909_v32 }
  0x3a   : > { %380 = vst [vmem:[#allocation2 + $0xd8] sm:$0xff] %v1909_v32  ;;  %381 = vst [vmem:[#allocation2 + $0x18] sm:$0xff] %v1909_v32 }
  0x3b   : > { %382 = vst [vmem:[#allocation2 + $0x50] sm:$0xff] %v1909_v32  ;;  %383 = vst [vmem:[#allocation2 + $0x68] sm:$0xff] %v1909_v32 }
  0x3c   : > { %384 = vst [vmem:[#allocation2 + $0x30] sm:$0xff] %v1909_v32  ;;  %385 = vst [vmem:[#allocation2 + $0x48] sm:$0xff] %v1909_v32 }
  0x3d   : > { %386 = vst [vmem:[#allocation2 + $0x80] sm:$0xff] %v1909_v32  ;;  %387 = vst [vmem:[#allocation2 + $0x88] sm:$0xff] %v1909_v32 }
  0x3e   : > { %388 = vst [vmem:[#allocation2 + $0xe8] sm:$0xff] %v1909_v32  ;;  %389 = vst [vmem:[#allocation2 + $0xb8] sm:$0xff] %v1909_v32 }
  0x3f   : > { %390 = vst [vmem:[#allocation2 + $0x60] sm:$0xff] %v1909_v32  ;;  %391 = vst [vmem:[#allocation2 + $0xf0] sm:$0xff] %v1909_v32 }
  0x40   : > { %392 = vst [vmem:[#allocation2 + $0x8] sm:$0xff] %v1909_v32  ;;  %393 = vst [vmem:[#allocation2 + $0x78] sm:$0xff] %v1909_v32 }
  0x41   : > { %394 = vst [vmem:[#allocation2 + $0x38] sm:$0xff] %v1909_v32  ;;  %395 = vst [vmem:[#allocation2 + $0x58] sm:$0xff] %v1909_v32 }
  0x42   : > { %396 = vst [vmem:[#allocation2 + $0x40] sm:$0xff] %v1909_v32  ;;  %397 = vst [vmem:[#allocation2 + $0xc8] sm:$0xff] %v1909_v32 }
  0x43   : > { %398 = vst [vmem:[#allocation2 + $0xe0] sm:$0xff] %v1909_v32  ;;  %399 = vst [vmem:[#allocation2 + $0x90] sm:$0xff] %v1909_v32 }
  0x44   : > { %400 = vst [vmem:[#allocation2 + $0x70] sm:$0xff] %v1909_v32  ;;  %401 = vst [vmem:[#allocation2 + $0xc0] sm:$0xff] %v1909_v32 }
  0x45   : > { %402 = vst [vmem:[#allocation2 + $0xa8] sm:$0xff] %v1909_v32  ;;  %403 = vst [vmem:[#allocation2 + $0xd0] sm:$0xff] %v1909_v32 }
  0x46   : > { %404 = vst [vmem:[#allocation2 + $0x10] sm:$0xff] %v1909_v32  ;;  %405 = vst [vmem:[#allocation2 + $0x28] sm:$0xff] %v1909_v32 }
  0x47   : > { %406 = vst [vmem:[#allocation2 + $0xa0] sm:$0xff] %v1909_v32  ;;  %407 = vst [vmem:[#allocation2 + $0xf8] sm:$0xff] %v1909_v32 }
  0x48   : > { %408 = vst [vmem:[#allocation2 + $0x20] sm:$0xff] %v1909_v32  ;;  %409 = vst [vmem:[#allocation2 + $0x98] sm:$0xff] %v1909_v32 }
  0x49 PF: > { %v1661_v33 = vld [vmem:[%s2066_s26 + $0x78] sm:$0xff]   ;;  %v1663_v35 = vld [vmem:[%s2066_s26 + $0x70] sm:$0xff]   ;;  %v1665_v37 = vld [vmem:[%s2066_s26 + $0x68] sm:$0xff]   ;;  %p1439_p13 = scmp.ne.s32.totalorder %s1891_s14, 1 }
  0x4a   : > { %v1662_v34 = vld [vmem:[%s2066_s26 + $0x38] sm:$0xff]   ;;  %1476 = vmatprep.subr.bf16.mxu0 %v1661_v33  ;;  %1588 = vmatprep.subr.bf16.mxu1 %v1661_v33  ;;  %v1664_v36 = vld [vmem:[%s2066_s26 + $0x30] sm:$0xff]   ;;  %v1666_v38 = vld [vmem:[%s2066_s26 + $0x28] sm:$0xff]  }
  0x4b   : > { %1477 = vmatpush3.bf16.msra.mxu0 %v1662_v34  ;;  %1596 = vmatpush3.bf16.msra.mxu1 %v1662_v34  ;;  %v1667_v39 = vld [vmem:[%s2066_s26 + $0x60] sm:$0xff]   ;;  %v1669_v41 = vld [vmem:[%s2066_s26 + $0x58] sm:$0xff]   ;;  %v1671_v43 = vld [vmem:[%s2066_s26 + $0x50] sm:$0xff]  }
  0x4c   : > { %1478 = vmatprep.subr.bf16.mxu0 %v1663_v35  ;;  %1589 = vmatprep.subr.bf16.mxu1 %v1663_v35  ;;  %v1668_v40 = vld [vmem:[%s2066_s26 + $0x20] sm:$0xff]   ;;  %v1670_v42 = vld [vmem:[%s2066_s26 + $0x18] sm:$0xff]   ;;  %v1672_v46 = vld [vmem:[%s2066_s26 + $0x10] sm:$0xff]  }
  0x4d   : > { %v1679_v44 = vld [vmem:[%s2073_s12 + $0x4] ss:$8 sps:$4 sm:$0xff]   ;;  %v1677_v51 = vld [vmem:[%s2073_s12] ss:$8 sps:$4 sm:$0xff]   ;;  %v1683_v53 = vld [vmem:[%s2073_s12 + $0x14] ss:$8 sps:$4 sm:$0xff]  }
  0x4e   : > { %v1682_v45 = vld [vmem:[%s2073_s12 + $0x84] ss:$8 sps:$4 sm:$0xff]   ;;  %794 = vmatprep.mubr.bf16.mxu0 %v1679_v44  ;;  %v1680_v52 = vld [vmem:[%s2073_s12 + $0x80] ss:$8 sps:$4 sm:$0xff]   ;;  %v1685_v54 = vld [vmem:[%s2073_s12 + $0x94] ss:$8 sps:$4 sm:$0xff]  }
  0x4f   : > { %1479 = vmatpush3.bf16.msra.mxu0 %v1664_v36  ;;  %1597 = vmatpush3.bf16.msra.mxu1 %v1664_v36  ;;  %v1673_v47 = vld [vmem:[%s2066_s26 + $0x48] sm:$0xff]   ;;  %v1675_v49 = vld [vmem:[%s2066_s26 + $0x40] sm:$0xff]   ;;  %v1687_v55 = vld [vmem:[%s2073_s12 + $0x10] ss:$8 sps:$4 sm:$0xff]  }
  0x50   : > { %1480 = vmatprep.subr.bf16.mxu0 %v1665_v37  ;;  %1590 = vmatprep.subr.bf16.mxu1 %v1665_v37  ;;  %v1674_v48 = vld [vmem:[%s2066_s26 + $0x8] sm:$0xff]   ;;  %v1676_v50 = vld [vmem:[%s2066_s26] sm:$0xff]   ;;  %v1688_v56 = vld [vmem:[%s2073_s12 + $0x90] ss:$8 sps:$4 sm:$0xff]  }
  0x51   : > { %858 = vmatprep.mubr.bf16.mxu1 %v1682_v45  ;;  %v1689_v57 = vld [vmem:[%s2073_s12 + $0x24] ss:$8 sps:$4 sm:$0xff]   ;;  %v1693_v59 = vld [vmem:[%s2073_s12 + $0x20] ss:$8 sps:$4 sm:$0xff]   ;;  %v1695_v61 = vld [vmem:[%s2073_s12 + $0x34] ss:$8 sps:$4 sm:$0xff]  }
  0x52   : > { %v1691_v58 = vld [vmem:[%s2073_s12 + $0xa4] ss:$8 sps:$4 sm:$0xff]   ;;  %v1694_v60 = vld [vmem:[%s2073_s12 + $0xa0] ss:$8 sps:$4 sm:$0xff]   ;;  %v1697_v62 = vld [vmem:[%s2073_s12 + $0xb4] ss:$8 sps:$4 sm:$0xff]  }
  0x53   : > { %1481 = vmatpush3.bf16.msra.mxu0 %v1666_v38  ;;  %1598 = vmatpush3.bf16.msra.mxu1 %v1666_v38  ;;  %v1699_v63 = vld [vmem:[%s2073_s12 + $0x30] ss:$8 sps:$4 sm:$0xff]   ;;  %v1701_v1 = vld [vmem:[%s2073_s12 + $0x44] ss:$8 sps:$4 sm:$0xff]   ;;  %v1705_v3 = vld [vmem:[%s2073_s12 + $0x40] ss:$8 sps:$4 sm:$0xff]  }
  0x54   : > { %1482 = vmatprep.subr.bf16.mxu0 %v1667_v39  ;;  %1591 = vmatprep.subr.bf16.mxu1 %v1667_v39  ;;  %v1700_v0 = vld [vmem:[%s2073_s12 + $0xb0] ss:$8 sps:$4 sm:$0xff]   ;;  %v1703_v2 = vld [vmem:[%s2073_s12 + $0xc4] ss:$8 sps:$4 sm:$0xff]   ;;  %v1706_v4 = vld [vmem:[%s2073_s12 + $0xc0] ss:$8 sps:$4 sm:$0xff]  }
  0x55   : > { %v1707_v5 = vld [vmem:[%s2073_s12 + $0x54] ss:$8 sps:$4 sm:$0xff]   ;;  %v1711_v7 = vld [vmem:[%s2073_s12 + $0x50] ss:$8 sps:$4 sm:$0xff]   ;;  %v1713_v9 = vld [vmem:[%s2073_s12 + $0x64] ss:$8 sps:$4 sm:$0xff]  }
  0x56   : > { %v1709_v6 = vld [vmem:[%s2073_s12 + $0xd4] ss:$8 sps:$4 sm:$0xff]   ;;  %v1712_v8 = vld [vmem:[%s2073_s12 + $0xd0] ss:$8 sps:$4 sm:$0xff]   ;;  %v1715_v10 = vld [vmem:[%s2073_s12 + $0xe4] ss:$8 sps:$4 sm:$0xff]  }
  0x57   : > { %1483 = vmatpush3.bf16.msra.mxu0 %v1668_v40  ;;  %1599 = vmatpush3.bf16.msra.mxu1 %v1668_v40  ;;  %v1717_v11 = vld [vmem:[%s2073_s12 + $0x60] ss:$8 sps:$4 sm:$0xff]   ;;  %v1719_v13 = vld [vmem:[%s2073_s12 + $0x74] ss:$8 sps:$4 sm:$0xff]   ;;  %v1723_v15 = vld [vmem:[%s2073_s12 + $0x70] ss:$8 sps:$4 sm:$0xff]  }
  0x58   : > { %1484 = vmatprep.subr.bf16.mxu0 %v1669_v41  ;;  %1592 = vmatprep.subr.bf16.mxu1 %v1669_v41  ;;  %v1718_v12 = vld [vmem:[%s2073_s12 + $0xe0] ss:$8 sps:$4 sm:$0xff]   ;;  %v1721_v14 = vld [vmem:[%s2073_s12 + $0xf4] ss:$8 sps:$4 sm:$0xff]   ;;  %v1724_v16 = vld [vmem:[%s2073_s12 + $0xf0] ss:$8 sps:$4 sm:$0xff]  }
  0x59   : > { %v410_v19 = vld [vmem:[#allocation2 + $0xb0] sm:$0xff]  ;;  %v426_v21 = vld [vmem:[#allocation2 + $0x38] sm:$0xff]  ;;  %v411_v29 = vld [vmem:[#allocation2] sm:$0xff] }
  0x5a   : > { %v427_v31 = vld [vmem:[#allocation2 + $0x58] sm:$0xff]  ;;  %v428_v41 = vld [vmem:[#allocation2 + $0x40] sm:$0xff] }
  0x5b   : > { %1485 = vmatpush3.bf16.msra.mxu0 %v1670_v42  ;;  %1600 = vmatpush3.bf16.msra.mxu1 %v1670_v42  ;;  %v412_v39 = vld [vmem:[#allocation2 + $0xd8] sm:$0xff] }
  0x5c   : > { %1486 = vmatprep.subr.bf16.mxu0 %v1671_v43  ;;  %1593 = vmatprep.subr.bf16.mxu1 %v1671_v43 }
  0x5f   : > { %1487 = vmatpush3.bf16.msra.mxu0 %v1672_v46  ;;  %1601 = vmatpush3.bf16.msra.mxu1 %v1672_v46 }
  0x60   : > { %1488 = vmatprep.subr.bf16.mxu0 %v1673_v47  ;;  %1594 = vmatprep.subr.bf16.mxu1 %v1673_v47 }
  0x63   : > { %1489 = vmatpush3.bf16.msra.mxu0 %v1674_v48  ;;  %1602 = vmatpush3.bf16.msra.mxu1 %v1674_v48 }
  0x64   : > { %1490 = vmatprep.subr.bf16.mxu0 %v1675_v49  ;;  %1595 = vmatprep.subr.bf16.mxu1 %v1675_v49  ;;  %v413_v49 = vld [vmem:[#allocation2 + $0x18] sm:$0xff] }
  0x67   : > { %1491 = vmatpush3.bf16.msra.mxu0 %v1676_v50  ;;  %1603 = vmatpush3.bf16.msra.mxu1 %v1676_v50 }
  0x6a   : > { %795 = vmatmul.mubr.bf16.vlgmr.msra.gmra.mxu0 %v1677_v51  ;;  %859 = vmatmul.mubr.bf16.vlgmr.msra.gmra.mxu1 %v1680_v52  ;;  %v429_v51 = vld [vmem:[#allocation2 + $0xc8] sm:$0xff] }
  0x6b   : > { %802 = vmatprep.mubr.bf16.mxu0 %v1683_v53  ;;  %866 = vmatprep.mubr.bf16.mxu1 %v1685_v54 }
  0x72   : > { %803 = vmatmul.mubr.bf16.gmra.mxu0 %v1687_v55  ;;  %867 = vmatmul.mubr.bf16.gmra.mxu1 %v1688_v56 }
  0x73   : > { %810 = vmatprep.mubr.bf16.mxu0 %v1689_v57  ;;  %874 = vmatprep.mubr.bf16.mxu1 %v1691_v58 }
  0x7a   : > { %811 = vmatmul.mubr.bf16.gmra.mxu0 %v1693_v59  ;;  %875 = vmatmul.mubr.bf16.gmra.mxu1 %v1694_v60  ;;  %v414_v59 = vld [vmem:[#allocation2 + $0x50] sm:$0xff] }
  0x7b   : > { %818 = vmatprep.mubr.bf16.mxu0 %v1695_v61  ;;  %882 = vmatprep.mubr.bf16.mxu1 %v1697_v62  ;;  %v430_v61 = vld [vmem:[#allocation2 + $0xe0] sm:$0xff] }
  0x82   : > { %819 = vmatmul.mubr.bf16.gmra.mxu0 %v1699_v63  ;;  %883 = vmatmul.mubr.bf16.gmra.mxu1 %v1700_v0 }
  0x83   : > { %826 = vmatprep.mubr.bf16.mxu0 %v1701_v1  ;;  %890 = vmatprep.mubr.bf16.mxu1 %v1703_v2 }
  0x8a   : > { %827 = vmatmul.mubr.bf16.gmra.mxu0 %v1705_v3  ;;  %891 = vmatmul.mubr.bf16.gmra.mxu1 %v1706_v4 }
  0x8b   : > { %834 = vmatprep.mubr.bf16.mxu0 %v1707_v5  ;;  %898 = vmatprep.mubr.bf16.mxu1 %v1709_v6  ;;  %v415_v5 = vld [vmem:[#allocation2 + $0x68] sm:$0xff] }
  0x92   : > { %835 = vmatmul.mubr.bf16.gmra.mxu0 %v1711_v7  ;;  %899 = vmatmul.mubr.bf16.gmra.mxu1 %v1712_v8  ;;  %v431_v7 = vld [vmem:[#allocation2 + $0x90] sm:$0xff] }
  0x93   : > { %842 = vmatprep.mubr.bf16.mxu0 %v1713_v9  ;;  %906 = vmatprep.mubr.bf16.mxu1 %v1715_v10 }
  0x9a   : > { %843 = vmatmul.mubr.bf16.gmra.mxu0 %v1717_v11  ;;  %907 = vmatmul.mubr.bf16.gmra.mxu1 %v1718_v12 }
  0x9b   : > { %850 = vmatprep.mubr.bf16.mxu0 %v1719_v13  ;;  %914 = vmatprep.mubr.bf16.mxu1 %v1721_v14 }
  0xa2   : > { %851 = vmatmul.mubr.bf16.gmra.mxu0 %v1723_v15  ;;  %915 = vmatmul.mubr.bf16.gmra.mxu1 %v1724_v16  ;;  %v416_v15 = vld [vmem:[#allocation2 + $0x30] sm:$0xff] }
 0x12a   : > { %v1492_v17 = vpop.f32.mrf.mxu0  ;;  %v1540_v18 = vpop.f32.mrf.mxu1 }
 0x12c   : > { %v1493_v20 = vpop.f32.mrf.mxu0  ;;  %v1541_v22 = vpop.f32.mrf.mxu1 }
 0x12d   : > { %v1494_v23 = vadd.f32 %v1493_v20, %v1492_v17  ;;  %v1542_v24 = vadd.f32 %v1541_v22, %v1540_v18  ;;  %v432_v17 = vld [vmem:[#allocation2 + $0x70] sm:$0xff] }
 0x12e   : > { %v1495_v25 = vpop.f32.mrf.mxu0  ;;  %v1543_v26 = vpop.f32.mrf.mxu1 }
 0x12f   : > { %v923_v27 = vadd.f32 %v1494_v23, %v410_v19  ;;  %v939_v28 = vadd.f32 %v1542_v24, %v426_v21 }
 0x130   : > { %v1496_v30 = vpop.f32.mrf.mxu0  ;;  %v1544_v32 = vpop.f32.mrf.mxu1 }
 0x131   : > { %955 = vst [vmem:[#allocation2 + $0xb0] sm:$0xff] %v923_v27  ;;  %971 = vst [vmem:[#allocation2 + $0x38] sm:$0xff] %v939_v28  ;;  %v1497_v33 = vadd.f32 %v1496_v30, %v1495_v25  ;;  %v1545_v34 = vadd.f32 %v1544_v32, %v1543_v26  ;;  %v417_v25 = vld [vmem:[#allocation2 + $0x48] sm:$0xff]  ;;  %v433_v27 = vld [vmem:[#allocation2 + $0xc0] sm:$0xff] }
 0x132   : > { %v1498_v35 = vpop.f32.mrf.mxu0  ;;  %v1546_v36 = vpop.f32.mrf.mxu1 }
 0x133   : > { %v924_v37 = vadd.f32 %v1497_v33, %v411_v29  ;;  %v940_v38 = vadd.f32 %v1545_v34, %v427_v31 }
 0x134   : > { %v1499_v40 = vpop.f32.mrf.mxu0  ;;  %v1547_v42 = vpop.f32.mrf.mxu1 }
 0x135   : > { %956 = vst [vmem:[#allocation2] sm:$0xff] %v924_v37  ;;  %972 = vst [vmem:[#allocation2 + $0x58] sm:$0xff] %v940_v38  ;;  %v1500_v43 = vadd.f32 %v1499_v40, %v1498_v35  ;;  %v1548_v44 = vadd.f32 %v1547_v42, %v1546_v36  ;;  %v418_v35 = vld [vmem:[#allocation2 + $0x80] sm:$0xff]  ;;  %v434_v37 = vld [vmem:[#allocation2 + $0xa8] sm:$0xff] }
 0x136   : > { %v1501_v45 = vpop.f32.mrf.mxu0  ;;  %v1549_v46 = vpop.f32.mrf.mxu1 }
 0x137   : > { %v925_v47 = vadd.f32 %v1500_v43, %v412_v39  ;;  %v941_v48 = vadd.f32 %v1548_v44, %v428_v41 }
 0x138   : > { %v1502_v50 = vpop.f32.mrf.mxu0  ;;  %v1550_v52 = vpop.f32.mrf.mxu1 }
 0x139   : > { %957 = vst [vmem:[#allocation2 + $0xd8] sm:$0xff] %v925_v47  ;;  %973 = vst [vmem:[#allocation2 + $0x40] sm:$0xff] %v941_v48  ;;  %v1503_v53 = vadd.f32 %v1502_v50, %v1501_v45  ;;  %v1551_v54 = vadd.f32 %v1550_v52, %v1549_v46  ;;  %v419_v45 = vld [vmem:[#allocation2 + $0x88] sm:$0xff]  ;;  %v435_v47 = vld [vmem:[#allocation2 + $0xd0] sm:$0xff] }
 0x13a   : > { %v1504_v55 = vpop.f32.mrf.mxu0  ;;  %v1552_v56 = vpop.f32.mrf.mxu1 }
 0x13b   : > { %v926_v57 = vadd.f32 %v1503_v53, %v413_v49  ;;  %v942_v58 = vadd.f32 %v1551_v54, %v429_v51 }
 0x13c   : > { %v1505_v60 = vpop.f32.mrf.mxu0  ;;  %v1553_v62 = vpop.f32.mrf.mxu1 }
 0x13d   : > { %958 = vst [vmem:[#allocation2 + $0x18] sm:$0xff] %v926_v57  ;;  %974 = vst [vmem:[#allocation2 + $0xc8] sm:$0xff] %v942_v58  ;;  %v1506_v63 = vadd.f32 %v1505_v60, %v1504_v55  ;;  %v1554_v0 = vadd.f32 %v1553_v62, %v1552_v56  ;;  %v420_v55 = vld [vmem:[#allocation2 + $0xe8] sm:$0xff]  ;;  %v436_v57 = vld [vmem:[#allocation2 + $0x10] sm:$0xff] }
 0x13e   : > { %v1507_v1 = vpop.f32.mrf.mxu0  ;;  %v1555_v2 = vpop.f32.mrf.mxu1 }
 0x13f   : > { %v927_v3 = vadd.f32 %v1506_v63, %v414_v59  ;;  %v943_v4 = vadd.f32 %v1554_v0, %v430_v61 }
 0x140   : > { %v1508_v6 = vpop.f32.mrf.mxu0  ;;  %v1556_v8 = vpop.f32.mrf.mxu1 }
 0x141   : > { %959 = vst [vmem:[#allocation2 + $0x50] sm:$0xff] %v927_v3  ;;  %975 = vst [vmem:[#allocation2 + $0xe0] sm:$0xff] %v943_v4  ;;  %v1509_v9 = vadd.f32 %v1508_v6, %v1507_v1  ;;  %v1557_v10 = vadd.f32 %v1556_v8, %v1555_v2  ;;  %v421_v1 = vld [vmem:[#allocation2 + $0xb8] sm:$0xff]  ;;  %v437_v3 = vld [vmem:[#allocation2 + $0x28] sm:$0xff] }
 0x142   : > { %v1510_v11 = vpop.f32.mrf.mxu0  ;;  %v1558_v12 = vpop.f32.mrf.mxu1 }
 0x143   : > { %v928_v13 = vadd.f32 %v1509_v9, %v415_v5  ;;  %v944_v14 = vadd.f32 %v1557_v10, %v431_v7 }
 0x144   : > { %v1511_v16 = vpop.f32.mrf.mxu0  ;;  %v1559_v18 = vpop.f32.mrf.mxu1 }
 0x145   : > { %960 = vst [vmem:[#allocation2 + $0x68] sm:$0xff] %v928_v13  ;;  %976 = vst [vmem:[#allocation2 + $0x90] sm:$0xff] %v944_v14  ;;  %v1512_v19 = vadd.f32 %v1511_v16, %v1510_v11  ;;  %v1560_v20 = vadd.f32 %v1559_v18, %v1558_v12  ;;  %v422_v11 = vld [vmem:[#allocation2 + $0x60] sm:$0xff] }
 0x146   : > { %v1513_v21 = vpop.f32.mrf.mxu0  ;;  %v1561_v22 = vpop.f32.mrf.mxu1  ;;  %v438_v13 = vld [vmem:[#allocation2 + $0xa0] sm:$0xff] }
 0x147   : > { %v929_v23 = vadd.f32 %v1512_v19, %v416_v15  ;;  %v945_v24 = vadd.f32 %v1560_v20, %v432_v17 }
 0x148   : > { %v1514_v26 = vpop.f32.mrf.mxu0  ;;  %v1562_v28 = vpop.f32.mrf.mxu1 }
 0x149   : > { %961 = vst [vmem:[#allocation2 + $0x30] sm:$0xff] %v929_v23  ;;  %977 = vst [vmem:[#allocation2 + $0x70] sm:$0xff] %v945_v24  ;;  %v1515_v29 = vadd.f32 %v1514_v26, %v1513_v21  ;;  %v1563_v30 = vadd.f32 %v1562_v28, %v1561_v22  ;;  %v423_v21 = vld [vmem:[#allocation2 + $0xf0] sm:$0xff]  ;;  %v439_v23 = vld [vmem:[#allocation2 + $0xf8] sm:$0xff] }
 0x14a   : > { %v1516_v31 = vpop.f32.mrf.mxu0  ;;  %v1564_v32 = vpop.f32.mrf.mxu1 }
 0x14b   : > { %v930_v33 = vadd.f32 %v1515_v29, %v417_v25  ;;  %v946_v34 = vadd.f32 %v1563_v30, %v433_v27 }
 0x14c   : > { %v1517_v36 = vpop.f32.mrf.mxu0  ;;  %v1565_v38 = vpop.f32.mrf.mxu1 }
 0x14d   : > { %962 = vst [vmem:[#allocation2 + $0x48] sm:$0xff] %v930_v33  ;;  %978 = vst [vmem:[#allocation2 + $0xc0] sm:$0xff] %v946_v34  ;;  %v1518_v39 = vadd.f32 %v1517_v36, %v1516_v31  ;;  %v1566_v40 = vadd.f32 %v1565_v38, %v1564_v32  ;;  %v424_v31 = vld [vmem:[#allocation2 + $0x8] sm:$0xff]  ;;  %v440_v33 = vld [vmem:[#allocation2 + $0x20] sm:$0xff] }
 0x14e   : > { %v1519_v41 = vpop.f32.mrf.mxu0  ;;  %v1567_v42 = vpop.f32.mrf.mxu1 }
 0x14f   : > { %v931_v43 = vadd.f32 %v1518_v39, %v418_v35  ;;  %v947_v44 = vadd.f32 %v1566_v40, %v434_v37 }
 0x150   : > { %v1520_v46 = vpop.f32.mrf.mxu0  ;;  %v1568_v48 = vpop.f32.mrf.mxu1 }
 0x151   : > { %963 = vst [vmem:[#allocation2 + $0x80] sm:$0xff] %v931_v43  ;;  %979 = vst [vmem:[#allocation2 + $0xa8] sm:$0xff] %v947_v44  ;;  %v1521_v49 = vadd.f32 %v1520_v46, %v1519_v41  ;;  %v1569_v50 = vadd.f32 %v1568_v48, %v1567_v42  ;;  %v425_v41 = vld [vmem:[#allocation2 + $0x78] sm:$0xff] }
 0x152   : > { %v1522_v51 = vpop.f32.mrf.mxu0  ;;  %v1570_v52 = vpop.f32.mrf.mxu1  ;;  %v441_v43 = vld [vmem:[#allocation2 + $0x98] sm:$0xff] }
 0x153   : > { %v932_v53 = vadd.f32 %v1521_v49, %v419_v45  ;;  %v948_v54 = vadd.f32 %v1569_v50, %v435_v47 }
 0x154   : > { %v1523_v56 = vpop.f32.mrf.mxu0  ;;  %v1571_v58 = vpop.f32.mrf.mxu1 }
 0x155   : > { %964 = vst [vmem:[#allocation2 + $0x88] sm:$0xff] %v932_v53  ;;  %980 = vst [vmem:[#allocation2 + $0xd0] sm:$0xff] %v948_v54  ;;  %v1524_v59 = vadd.f32 %v1523_v56, %v1522_v51  ;;  %v1572_v60 = vadd.f32 %v1571_v58, %v1570_v52 }
 0x156   : > { %v1525_v61 = vpop.f32.mrf.mxu0  ;;  %v1573_v62 = vpop.f32.mrf.mxu1 }
 0x157   : > { %v933_v63 = vadd.f32 %v1524_v59, %v420_v55  ;;  %v949_v0 = vadd.f32 %v1572_v60, %v436_v57 }
 0x158   : > { %v1526_v2 = vpop.f32.mrf.mxu0  ;;  %v1574_v4 = vpop.f32.mrf.mxu1 }
 0x159   : > { %965 = vst [vmem:[#allocation2 + $0xe8] sm:$0xff] %v933_v63  ;;  %981 = vst [vmem:[#allocation2 + $0x10] sm:$0xff] %v949_v0  ;;  %v1527_v5 = vadd.f32 %v1526_v2, %v1525_v61  ;;  %v1575_v6 = vadd.f32 %v1574_v4, %v1573_v62 }
 0x15a   : > { %v1528_v7 = vpop.f32.mrf.mxu0  ;;  %v1576_v8 = vpop.f32.mrf.mxu1 }
 0x15b   : > { %v934_v9 = vadd.f32 %v1527_v5, %v421_v1  ;;  %v950_v10 = vadd.f32 %v1575_v6, %v437_v3 }
 0x15c   : > { %v1529_v12 = vpop.f32.mrf.mxu0  ;;  %v1577_v14 = vpop.f32.mrf.mxu1 }
 0x15d   : > { %966 = vst [vmem:[#allocation2 + $0xb8] sm:$0xff] %v934_v9  ;;  %982 = vst [vmem:[#allocation2 + $0x28] sm:$0xff] %v950_v10  ;;  %v1530_v15 = vadd.f32 %v1529_v12, %v1528_v7  ;;  %v1578_v16 = vadd.f32 %v1577_v14, %v1576_v8 }
 0x15e   : > { %v1531_v17 = vpop.f32.mrf.mxu0  ;;  %v1579_v18 = vpop.f32.mrf.mxu1 }
 0x15f   : > { %v935_v19 = vadd.f32 %v1530_v15, %v422_v11  ;;  %v951_v20 = vadd.f32 %v1578_v16, %v438_v13 }
 0x160   : > { %v1532_v22 = vpop.f32.mrf.mxu0  ;;  %v1580_v24 = vpop.f32.mrf.mxu1 }
 0x161   : > { %967 = vst [vmem:[#allocation2 + $0x60] sm:$0xff] %v935_v19  ;;  %983 = vst [vmem:[#allocation2 + $0xa0] sm:$0xff] %v951_v20  ;;  %v1533_v25 = vadd.f32 %v1532_v22, %v1531_v17  ;;  %v1581_v26 = vadd.f32 %v1580_v24, %v1579_v18 }
 0x162   : > { %v1534_v27 = vpop.f32.mrf.mxu0  ;;  %v1582_v28 = vpop.f32.mrf.mxu1 }
 0x163   : > { %v936_v29 = vadd.f32 %v1533_v25, %v423_v21  ;;  %v952_v30 = vadd.f32 %v1581_v26, %v439_v23 }
 0x164   : > { %v1535_v32 = vpop.f32.mrf.mxu0  ;;  %v1583_v34 = vpop.f32.mrf.mxu1 }
 0x165   : > { %968 = vst [vmem:[#allocation2 + $0xf0] sm:$0xff] %v936_v29  ;;  %984 = vst [vmem:[#allocation2 + $0xf8] sm:$0xff] %v952_v30  ;;  %v1536_v35 = vadd.f32 %v1535_v32, %v1534_v27  ;;  %v1584_v36 = vadd.f32 %v1583_v34, %v1582_v28 }
 0x166   : > { %v1537_v37 = vpop.f32.mrf.mxu0  ;;  %v1585_v38 = vpop.f32.mrf.mxu1 }
 0x167   : > { %v937_v39 = vadd.f32 %v1536_v35, %v424_v31  ;;  %v953_v40 = vadd.f32 %v1584_v36, %v440_v33 }
 0x168   : > { %v1538_v42 = vpop.f32.mrf.mxu0  ;;  %v1586_v44 = vpop.f32.mrf.mxu1 }
 0x169   : > { %969 = vst [vmem:[#allocation2 + $0x8] sm:$0xff] %v937_v39  ;;  %985 = vst [vmem:[#allocation2 + $0x20] sm:$0xff] %v953_v40  ;;  %v1539_v45 = vadd.f32 %v1538_v42, %v1537_v37  ;;  %v1587_v46 = vadd.f32 %v1586_v44, %v1585_v38  ;;  %990 = sbr.rel (%p1439_p13) target bundleno = 449 (0x1c1), region = 78 }
 0x16b   : > { %v938_v47 = vadd.f32 %v1539_v45, %v425_v41  ;;  %v954_v48 = vadd.f32 %v1587_v46, %v441_v43 }
 0x16d   : > { %970 = vst [vmem:[#allocation2 + $0x78] sm:$0xff] %v938_v47  ;;  %986 = vst [vmem:[#allocation2 + $0x98] sm:$0xff] %v954_v48 }
 0x16e   : > { %v991_v49 = vld [vmem:[#allocation2 + $0xb0] sm:$0xff]  ;;  %v2128_v50 = vld [vmem:[%s2217_s2] ss:$0 sm:$0xff]  ;;  %v993_v54 = vld [vmem:[#allocation2 + $0xd8] sm:$0xff] }
 0x16f   : > { %v992_v51 = vld [vmem:[#allocation2] sm:$0xff]  ;;  %v1030_v52 = vadd.f32 %v2128_v50, %v991_v49  ;;  %v994_v55 = vld [vmem:[#allocation2 + $0x18] sm:$0xff]  ;;  %v995_v56 = vld [vmem:[#allocation2 + $0x50] sm:$0xff]  ;;  %v1032_v57 = vadd.f32 %v2128_v50, %v993_v54 }
 0x170   : > { %v1031_v53 = vadd.f32 %v2128_v50, %v992_v51  ;;  %v1033_v58 = vadd.f32 %v2128_v50, %v994_v55  ;;  %v1034_v59 = vadd.f32 %v2128_v50, %v995_v56  ;;  %v996_v60 = vld [vmem:[#allocation2 + $0x68] sm:$0xff]  ;;  %v997_v61 = vld [vmem:[#allocation2 + $0x30] sm:$0xff]  ;;  %v999_v3 = vld [vmem:[#allocation2 + $0x80] sm:$0xff] }
 0x171   : > { %v998_v62 = vld [vmem:[#allocation2 + $0x48] sm:$0xff]  ;;  %v1441_v63 = vmul.f32 -1.442695, %v1030_v52  ;;  %v1035_v1 = vadd.f32 %v2128_v50, %v996_v60  ;;  %v1036_v2 = vadd.f32 %v2128_v50, %v997_v61  ;;  %v1443_v5 = vmul.f32 -1.442695, %v1032_v57  ;;  %v1002_v11 = vld [vmem:[#allocation2 + $0xb8] sm:$0xff] }
 0x172   : > { %v1442_v0 = vmul.f32 -1.442695, %v1031_v53  ;;  %v1000_v4 = vld [vmem:[#allocation2 + $0x88] sm:$0xff]  ;;  %v1444_v6 = vmul.f32 -1.442695, %v1033_v58  ;;  %v1037_v7 = vadd.f32 %v2128_v50, %v998_v62  ;;  %v1038_v9 = vadd.f32 %v2128_v50, %v999_v3  ;;  %v1003_v14 = vld [vmem:[#allocation2 + $0x60] sm:$0xff] }
 0x173   : > { %1725 = vpow2.f32 %v1441_v63  ;;  %v1445_v8 = vmul.f32 -1.442695, %v1034_v59  ;;  %v1001_v10 = vld [vmem:[#allocation2 + $0xe8] sm:$0xff]  ;;  %v1446_v12 = vmul.f32 -1.442695, %v1035_v1  ;;  %v1039_v13 = vadd.f32 %v2128_v50, %v1000_v4  ;;  %v1004_v17 = vld [vmem:[#allocation2 + $0xf0] sm:$0xff] }
 0x174   : > { %1727 = vpow2.f32 %v1442_v0  ;;  %v1447_v15 = vmul.f32 -1.442695, %v1036_v2  ;;  %v1040_v16 = vadd.f32 %v2128_v50, %v1001_v10  ;;  %v1448_v18 = vmul.f32 -1.442695, %v1037_v7  ;;  %v1005_v20 = vld [vmem:[#allocation2 + $0x8] sm:$0xff]  ;;  %v1006_v23 = vld [vmem:[#allocation2 + $0x78] sm:$0xff] }
 0x175   : > { %1729 = vpow2.f32 %v1443_v5  ;;  %v1041_v19 = vadd.f32 %v2128_v50, %v1002_v11  ;;  %v1449_v21 = vmul.f32 -1.442695, %v1038_v9  ;;  %v1042_v22 = vadd.f32 %v2128_v50, %v1003_v14  ;;  %v1007_v52 = vld [vmem:[#allocation2 + $0x38] sm:$0xff]  ;;  %v1009_v58 = vld [vmem:[#allocation2 + $0x40] sm:$0xff]  ;;  %v1010_v62 = vld [vmem:[#allocation2 + $0xc8] sm:$0xff] }
 0x176   : > { %1731 = vpow2.f32 %v1444_v6  ;;  %v1450_v24 = vmul.f32 -1.442695, %v1039_v13  ;;  %v1043_v25 = vadd.f32 %v2128_v50, %v1004_v17  ;;  %v1451_v26 = vmul.f32 -1.442695, %v1040_v16  ;;  %v1008_v55 = vld [vmem:[#allocation2 + $0x58] sm:$0xff]  ;;  %v1011_v2 = vld [vmem:[#allocation2 + $0xe0] sm:$0xff] }
 0x177   : > { %1733 = vpow2.f32 %v1445_v8  ;;  %v1044_v27 = vadd.f32 %v2128_v50, %v1005_v20  ;;  %v1452_v28 = vmul.f32 -1.442695, %v1041_v19  ;;  %v1045_v29 = vadd.f32 %v2128_v50, %v1006_v23  ;;  %v1012_v6 = vld [vmem:[#allocation2 + $0x90] sm:$0xff]  ;;  %v1015_v20 = vld [vmem:[#allocation2 + $0xa8] sm:$0xff] }
 0x178   : > { %1735 = vpow2.f32 %v1446_v12  ;;  %v1453_v30 = vmul.f32 -1.442695, %v1042_v22  ;;  %v1454_v31 = vmul.f32 -1.442695, %v1043_v25  ;;  %v1046_v61 = vadd.f32 %v2128_v50, %v1007_v52  ;;  %v1013_v10 = vld [vmem:[#allocation2 + $0x70] sm:$0xff] }
 0x179   : > { %1737 = vpow2.f32 %v1447_v15  ;;  %v1455_v32 = vmul.f32 -1.442695, %v1044_v27  ;;  %v1456_v33 = vmul.f32 -1.442695, %v1045_v29  ;;  %v1047_v1 = vadd.f32 %v2128_v50, %v1008_v55  ;;  %v1014_v15 = vld [vmem:[#allocation2 + $0xc0] sm:$0xff] }
 0x17a   : > { %1739 = vpow2.f32 %v1448_v18  ;;  %v1048_v5 = vadd.f32 %v2128_v50, %v1009_v58  ;;  %v1049_v9 = vadd.f32 %v2128_v50, %v1010_v62  ;;  %v1457_v13 = vmul.f32 -1.442695, %v1046_v61 }
 0x17b   : > { %1741 = vpow2.f32 %v1449_v21  ;;  %v1050_v14 = vadd.f32 %v2128_v50, %v1011_v2  ;;  %v1458_v18 = vmul.f32 -1.442695, %v1047_v1  ;;  %v1051_v19 = vadd.f32 %v2128_v50, %v1012_v6 }
 0x17c   : > { %1743 = vpow2.f32 %v1450_v24  ;;  %v1459_v22 = vmul.f32 -1.442695, %v1048_v5  ;;  %v1052_v23 = vadd.f32 %v2128_v50, %v1013_v10  ;;  %v1016_v24 = vld [vmem:[#allocation2 + $0xd0] sm:$0xff]  ;;  %v1053_v27 = vadd.f32 %v2128_v50, %v1014_v15 }
 0x17d   : > { %1745 = vpow2.f32 %v1451_v26  ;;  %v1460_v26 = vmul.f32 -1.442695, %v1049_v9 }
 0x17e   : > { %1747 = vpow2.f32 %v1452_v28  ;;  %v1017_v28 = vld [vmem:[#allocation2 + $0x10] sm:$0xff] }
 0x17f   : > { %1749 = vpow2.f32 %v1453_v30  ;;  %v1461_v30 = vmul.f32 -1.442695, %v1050_v14 }
 0x180   : > { %v1726_v34 = vpop.eup %1725  ;;  %1751 = vpow2.f32 %v1454_v31  ;;  %v1054_v31 = vadd.f32 %v2128_v50, %v1015_v20 }
 0x181   : > { %v1728_v35 = vpop.eup %1727  ;;  %v1158_v36 = vadd.f32 1.0, %v1726_v34  ;;  %1753 = vpow2.f32 %v1455_v32  ;;  %v1018_v32 = vld [vmem:[#allocation2 + $0x28] sm:$0xff]  ;;  %v1462_v34 = vmul.f32 -1.442695, %v1051_v19 }
 0x182   : > { %v1730_v37 = vpop.eup %1729  ;;  %v1159_v38 = vadd.f32 1.0, %v1728_v35  ;;  %1755 = vpow2.f32 %v1456_v33  ;;  %v1055_v35 = vadd.f32 %v2128_v50, %v1016_v24 }
 0x183   : > { %v1732_v39 = vpop.eup %1731  ;;  %1757 = vrcp.f32 %v1158_v36  ;;  %v1160_v40 = vadd.f32 1.0, %v1730_v37  ;;  %v1019_v36 = vld [vmem:[#allocation2 + $0xa0] sm:$0xff] }
 0x184   : > { %v1734_v41 = vpop.eup %1733  ;;  %1759 = vrcp.f32 %v1159_v38  ;;  %v1161_v42 = vadd.f32 1.0, %v1732_v39  ;;  %v1463_v38 = vmul.f32 -1.442695, %v1052_v23  ;;  %v1056_v39 = vadd.f32 %v2128_v50, %v1017_v28 }
 0x185   : > { %v1736_v43 = vpop.eup %1735  ;;  %1761 = vrcp.f32 %v1160_v40  ;;  %v1162_v44 = vadd.f32 1.0, %v1734_v41  ;;  %v1020_v40 = vld [vmem:[#allocation2 + $0xf8] sm:$0xff] }
 0x186   : > { %v1738_v45 = vpop.eup %1737  ;;  %1763 = vrcp.f32 %v1161_v42  ;;  %v1163_v46 = vadd.f32 1.0, %v1736_v43  ;;  %v1464_v42 = vmul.f32 -1.442695, %v1053_v27  ;;  %v1057_v43 = vadd.f32 %v2128_v50, %v1018_v32 }
 0x187   : > { %v1740_v47 = vpop.eup %1739  ;;  %1765 = vrcp.f32 %v1162_v44  ;;  %v1164_v48 = vadd.f32 1.0, %v1738_v45  ;;  %v1021_v44 = vld [vmem:[#allocation2 + $0x20] sm:$0xff]  ;;  %v1059_v52 = vadd.f32 %v2128_v50, %v1020_v40 }
 0x188   : > { %v1742_v49 = vpop.eup %1741  ;;  %1767 = vrcp.f32 %v1163_v46  ;;  %v1165_v51 = vadd.f32 1.0, %v1740_v47  ;;  %v1465_v46 = vmul.f32 -1.442695, %v1054_v31  ;;  %v1058_v47 = vadd.f32 %v2128_v50, %v1019_v36 }
 0x189   : > { %v1744_v53 = vpop.eup %1743  ;;  %1769 = vrcp.f32 %v1164_v48  ;;  %v1166_v54 = vadd.f32 1.0, %v1742_v49  ;;  %v1022_v48 = vld [vmem:[#allocation2 + $0x98] sm:$0xff]  ;;  %v1060_v55 = vadd.f32 %v2128_v50, %v1021_v44  ;;  %v1470_v62 = vmul.f32 -1.442695, %v1059_v52 }
 0x18a   : > { %v1746_v56 = vpop.eup %1745  ;;  %1771 = vrcp.f32 %v1165_v51  ;;  %v1167_v57 = vadd.f32 1.0, %v1744_v53  ;;  %v1466_v51 = vmul.f32 -1.442695, %v1055_v35  ;;  %v1061_v58 = vadd.f32 %v2128_v50, %v1022_v48 }
 0x18b   : > { %v1748_v59 = vpop.eup %1747  ;;  %1773 = vrcp.f32 %v1166_v54  ;;  %v1168_v60 = vadd.f32 1.0, %v1746_v56  ;;  %v1467_v54 = vmul.f32 -1.442695, %v1056_v39 }
 0x18c   : > { %v1750_v63 = vpop.eup %1749  ;;  %1775 = vrcp.f32 %v1167_v57  ;;  %v1169_v0 = vadd.f32 1.0, %v1748_v59  ;;  %v1468_v57 = vmul.f32 -1.442695, %v1057_v43  ;;  %v1472_v2 = vmul.f32 -1.442695, %v1061_v58 }
 0x18d   : > { %v1752_v3 = vpop.eup %1751  ;;  %1777 = vrcp.f32 %v1168_v60  ;;  %v1170_v4 = vadd.f32 1.0, %v1750_v63  ;;  %v1469_v60 = vmul.f32 -1.442695, %v1058_v47 }
 0x18e   : > { %v1754_v7 = vpop.eup %1753  ;;  %1779 = vrcp.f32 %v1169_v0  ;;  %v1171_v8 = vadd.f32 1.0, %v1752_v3  ;;  %v1471_v0 = vmul.f32 -1.442695, %v1060_v55 }
 0x18f   : > { %v1756_v11 = vpop.eup %1755  ;;  %1781 = vrcp.f32 %v1170_v4  ;;  %v1172_v12 = vadd.f32 1.0, %v1754_v7 }
 0x190   : > { %v1758_v16 = vpop.eup %1757  ;;  %1783 = vrcp.f32 %v1171_v8  ;;  %v1173_v17 = vadd.f32 1.0, %v1756_v11 }
 0x191   : > { %v1760_v21 = vpop.eup %1759  ;;  %1254 = vst [vmem:[%s2071_s30] sm:$0xff] %v1758_v16  ;;  %1785 = vrcp.f32 %v1172_v12 }
 0x192   : > { %v1762_v25 = vpop.eup %1761  ;;  %1255 = vst [vmem:[%s2071_s30 + $0x8] sm:$0xff] %v1760_v21  ;;  %1787 = vrcp.f32 %v1173_v17 }
 0x193   : > { %v1764_v29 = vpop.eup %1763  ;;  %1256 = vst [vmem:[%s2071_s30 + $0x10] sm:$0xff] %v1762_v25  ;;  %1789 = vpow2.f32 %v1457_v13 }
 0x194   : > { %v1766_v33 = vpop.eup %1765  ;;  %1257 = vst [vmem:[%s2071_s30 + $0x18] sm:$0xff] %v1764_v29  ;;  %1791 = vpow2.f32 %v1458_v18 }
 0x195   : > { %v1768_v37 = vpop.eup %1767  ;;  %1258 = vst [vmem:[%s2071_s30 + $0x20] sm:$0xff] %v1766_v33  ;;  %1793 = vpow2.f32 %v1459_v22 }
 0x196   : > { %v1770_v41 = vpop.eup %1769  ;;  %1259 = vst [vmem:[%s2071_s30 + $0x28] sm:$0xff] %v1768_v37  ;;  %1795 = vpow2.f32 %v1460_v26 }
 0x197   : > { %v1772_v45 = vpop.eup %1771  ;;  %1260 = vst [vmem:[%s2071_s30 + $0x30] sm:$0xff] %v1770_v41  ;;  %1797 = vpow2.f32 %v1461_v30 }
 0x198   : > { %v1774_v49 = vpop.eup %1773  ;;  %1261 = vst [vmem:[%s2071_s30 + $0x38] sm:$0xff] %v1772_v45  ;;  %1799 = vpow2.f32 %v1462_v34 }
 0x199   : > { %v1776_v53 = vpop.eup %1775  ;;  %1262 = vst [vmem:[%s2071_s30 + $0x40] sm:$0xff] %v1774_v49  ;;  %1801 = vpow2.f32 %v1463_v38 }
 0x19a   : > { %v1778_v56 = vpop.eup %1777  ;;  %1263 = vst [vmem:[%s2071_s30 + $0x48] sm:$0xff] %v1776_v53  ;;  %1803 = vpow2.f32 %v1464_v42 }
 0x19b   : > { %v1780_v59 = vpop.eup %1779  ;;  %1264 = vst [vmem:[%s2071_s30 + $0x50] sm:$0xff] %v1778_v56  ;;  %1805 = vpow2.f32 %v1465_v46 }
 0x19c   : > { %v1782_v61 = vpop.eup %1781  ;;  %1265 = vst [vmem:[%s2071_s30 + $0x58] sm:$0xff] %v1780_v59  ;;  %1807 = vpow2.f32 %v1466_v51 }
 0x19d   : > { %v1784_v63 = vpop.eup %1783  ;;  %1266 = vst [vmem:[%s2071_s30 + $0x60] sm:$0xff] %v1782_v61  ;;  %1809 = vpow2.f32 %v1467_v54 }
 0x19e   : > { %v1786_v1 = vpop.eup %1785  ;;  %1267 = vst [vmem:[%s2071_s30 + $0x68] sm:$0xff] %v1784_v63  ;;  %1811 = vpow2.f32 %v1468_v57 }
 0x19f   : > { %v1788_v3 = vpop.eup %1787  ;;  %1268 = vst [vmem:[%s2071_s30 + $0x70] sm:$0xff] %v1786_v1  ;;  %1813 = vpow2.f32 %v1469_v60 }
 0x1a0   : > { %v1790_v50 = vpop.eup %1789  ;;  %1269 = vst [vmem:[%s2071_s30 + $0x78] sm:$0xff] %v1788_v3  ;;  %1815 = vpow2.f32 %v1470_v62 }
 0x1a1   : > { %v1792_v4 = vpop.eup %1791  ;;  %v1174_v5 = vadd.f32 1.0, %v1790_v50  ;;  %1817 = vpow2.f32 %v1471_v0 }
 0x1a2   : > { %v1794_v6 = vpop.eup %1793  ;;  %v1175_v7 = vadd.f32 1.0, %v1792_v4  ;;  %1819 = vpow2.f32 %v1472_v2 }
 0x1a3   : > { %v1796_v8 = vpop.eup %1795  ;;  %1821 = vrcp.f32 %v1174_v5  ;;  %v1176_v9 = vadd.f32 1.0, %v1794_v6 }
 0x1a4   : > { %v1798_v10 = vpop.eup %1797  ;;  %1823 = vrcp.f32 %v1175_v7  ;;  %v1177_v11 = vadd.f32 1.0, %v1796_v8 }
 0x1a5   : > { %v1800_v12 = vpop.eup %1799  ;;  %1825 = vrcp.f32 %v1176_v9  ;;  %v1178_v13 = vadd.f32 1.0, %v1798_v10 }
 0x1a6   : > { %v1802_v14 = vpop.eup %1801  ;;  %1827 = vrcp.f32 %v1177_v11  ;;  %v1179_v15 = vadd.f32 1.0, %v1800_v12 }
 0x1a7   : > { %v1804_v16 = vpop.eup %1803  ;;  %1829 = vrcp.f32 %v1178_v13  ;;  %v1180_v17 = vadd.f32 1.0, %v1802_v14 }
 0x1a8   : > { %v1806_v18 = vpop.eup %1805  ;;  %1831 = vrcp.f32 %v1179_v15  ;;  %v1181_v19 = vadd.f32 1.0, %v1804_v16 }
 0x1a9   : > { %v1808_v20 = vpop.eup %1807  ;;  %1833 = vrcp.f32 %v1180_v17  ;;  %v1182_v21 = vadd.f32 1.0, %v1806_v18 }
 0x1aa   : > { %v1810_v22 = vpop.eup %1809  ;;  %1835 = vrcp.f32 %v1181_v19  ;;  %v1183_v23 = vadd.f32 1.0, %v1808_v20 }
 0x1ab   : > { %v1812_v24 = vpop.eup %1811  ;;  %1837 = vrcp.f32 %v1182_v21  ;;  %v1184_v25 = vadd.f32 1.0, %v1810_v22 }
 0x1ac   : > { %v1814_v26 = vpop.eup %1813  ;;  %1839 = vrcp.f32 %v1183_v23  ;;  %v1185_v27 = vadd.f32 1.0, %v1812_v24 }
 0x1ad   : > { %v1816_v28 = vpop.eup %1815  ;;  %1841 = vrcp.f32 %v1184_v25  ;;  %v1186_v29 = vadd.f32 1.0, %v1814_v26 }
 0x1ae   : > { %v1818_v30 = vpop.eup %1817  ;;  %1843 = vrcp.f32 %v1185_v27  ;;  %v1187_v31 = vadd.f32 1.0, %v1816_v28 }
 0x1af   : > { %v1820_v32 = vpop.eup %1819  ;;  %1845 = vrcp.f32 %v1186_v29  ;;  %v1188_v33 = vadd.f32 1.0, %v1818_v30 }
 0x1b0   : > { %v1822_v34 = vpop.eup %1821  ;;  %1847 = vrcp.f32 %v1187_v31  ;;  %v1189_v35 = vadd.f32 1.0, %v1820_v32 }
 0x1b1   : > { %v1824_v36 = vpop.eup %1823  ;;  %1270 = vst [vmem:[%s2071_s30 + $0x80] sm:$0xff] %v1822_v34  ;;  %1849 = vrcp.f32 %v1188_v33 }
 0x1b2   : > { %v1826_v37 = vpop.eup %1825  ;;  %1271 = vst [vmem:[%s2071_s30 + $0x88] sm:$0xff] %v1824_v36  ;;  %1851 = vrcp.f32 %v1189_v35 }
 0x1b3   : > { %v1828_v38 = vpop.eup %1827  ;;  %1272 = vst [vmem:[%s2071_s30 + $0x90] sm:$0xff] %v1826_v37 }
 0x1b4   : > { %v1830_v39 = vpop.eup %1829  ;;  %1273 = vst [vmem:[%s2071_s30 + $0x98] sm:$0xff] %v1828_v38 }
 0x1b5   : > { %v1832_v40 = vpop.eup %1831  ;;  %1274 = vst [vmem:[%s2071_s30 + $0xa0] sm:$0xff] %v1830_v39 }
 0x1b6   : > { %v1834_v41 = vpop.eup %1833  ;;  %1275 = vst [vmem:[%s2071_s30 + $0xa8] sm:$0xff] %v1832_v40 }
 0x1b7   : > { %v1836_v42 = vpop.eup %1835  ;;  %1276 = vst [vmem:[%s2071_s30 + $0xb0] sm:$0xff] %v1834_v41 }
 0x1b8   : > { %v1838_v43 = vpop.eup %1837  ;;  %1277 = vst [vmem:[%s2071_s30 + $0xb8] sm:$0xff] %v1836_v42 }
 0x1b9   : > { %v1840_v44 = vpop.eup %1839  ;;  %1278 = vst [vmem:[%s2071_s30 + $0xc0] sm:$0xff] %v1838_v43 }
 0x1ba   : > { %v1842_v45 = vpop.eup %1841  ;;  %1279 = vst [vmem:[%s2071_s30 + $0xc8] sm:$0xff] %v1840_v44 }
 0x1bb   : > { %v1844_v46 = vpop.eup %1843  ;;  %1280 = vst [vmem:[%s2071_s30 + $0xd0] sm:$0xff] %v1842_v45 }
 0x1bc   : > { %v1846_v47 = vpop.eup %1845  ;;  %1281 = vst [vmem:[%s2071_s30 + $0xd8] sm:$0xff] %v1844_v46 }
 0x1bd   : > { %v1848_v48 = vpop.eup %1847  ;;  %1282 = vst [vmem:[%s2071_s30 + $0xe0] sm:$0xff] %v1846_v47 }
 0x1be   : > { %v1850_v49 = vpop.eup %1849  ;;  %1283 = vst [vmem:[%s2071_s30 + $0xe8] sm:$0xff] %v1848_v48 }
 0x1bf   : > { %v1852_v51 = vpop.eup %1851  ;;  %1284 = vst [vmem:[%s2071_s30 + $0xf0] sm:$0xff] %v1850_v49 }
 0x1c0   : > { %1285 = vst [vmem:[%s2071_s30 + $0xf8] sm:$0xff] %v1852_v51 }
 0x1c1 PF: > { %s13_s18 = sadd.s32 1, %s1907_s18   ;;  %s2219_s12 = smov %s1887_s13 }
 0x1c2   : > { %p10_p0 = scmp.ge.s32.totalorder %s13_s18, 6   ;;  %s2220_s13 = smov %s1981_s25 }
 0x1c3   : > { %s2221_s14 = smov %s1899_s16  ;;  %s2222_s15 = smov %s1903_s17 }
 0x1c4   : > { %s2223_s16 = smov %s2226_s19  ;;  %s2224_s17 = smov %s2230_s20 }
 0x1c5   :  { %12 = sbr.rel (!%p10_p0) target bundleno = 4 (0x4), region = 116 }

</bundles_post_ra>
